<compile_context>
chip_gen: v7x
topology: tpu7x:2x2x1
jax: 0.10.0
libtpu: 0.0.40
codegen_flags: <defaults>
</compile_context>

<pallas_src>
import jax
import jax.numpy as jnp
from jax.experimental import pallas as pl
from jax.experimental.pallas import tpu as pltpu


def _round_up(x, m):
    return (x + m - 1) // m * m


def _vmem_capacity_bytes():
    try:
        return int(pltpu.get_tpu_info().vmem_capacity_bytes)
    except Exception:
        return 64 << 20          # conservative (v7x-sized) fallback


def _block_vmem_bytes(shape, dtype):
    """Conservative VMEM footprint of one block (sublane/lane padding included)."""
    shape = tuple(int(d) for d in shape)
    if len(shape) < 2:
        shape = (1,) * (2 - len(shape)) + shape
    lead = 1
    for d in shape[:-2]:
        lead *= d
    return (lead * _round_up(shape[-2], 8) * _round_up(shape[-1], 128)
            * jnp.dtype(dtype).itemsize)


def _vmem_limit(block_bytes, cap, extra=0):
    est = (4 << 20) + int(extra) + sum(2 * int(b) for b in block_bytes)
    hi = max(32 << 20, min(cap * 3 // 4, 96 << 20))   # headroom: <=48 MiB on v7x
    return int(min(max(est, 32 << 20), hi))


def _choose_th(h_out, wd, cp, n, budget_bytes, row_bytes=4, min_steps=2):
    """Largest divisor TH of h_out whose (TH*wd, cp) tile fits the budget, is a legal
    block (TH*wd multiple of 8, or the single whole-sample tile) and, when possible,
    leaves >= min_steps total grid steps (so both v7x TensorCores get work)."""
    cands = [t for t in range(h_out, 0, -1)
             if h_out % t == 0 and (t == h_out or (t * wd) % 8 == 0)]
    fitting = [t for t in cands if t * wd * cp * row_bytes <= budget_bytes]
    pool = fitting if fitting else cands[-1:]   # fallback may exceed the budget (rare)
    for t in pool:                              # descending: biggest legal tile first
        if n * (h_out // t) >= min_steps:
            return t
    return pool[-1]


def _block_forward_impl(x_nchw, weight, bias, stride, compute_dtype):
    N, C_in, H, W = x_nchw.shape
    C_out = weight.shape[0]
    KH = KW = 4
    s = int(stride)
    eps = 1e-5

    Hp, Wp = H + 2, W + 2
    H_out = (Hp - KH) // s + 1
    W_out = (Wp - KW) // s + 1
    P = H_out * W_out                      # true spatial count for the norm
    a_max = (KH - 1) // s                  # max tap offset in decimated (residue) space
    Hd, Wd = a_max + H_out, a_max + W_out  # rows/cols kept per residue group
    G = s * s
    Cp = _round_up(max(C_out, 128), 128)   # lane-dense output channels
    K = KH * KW * C_in                     # merged contraction depth

    cap = _vmem_capacity_bytes()
    big_vmem = cap >= (100 << 20)          # v5e/v6e (128 MiB) vs v7x (64 MiB)
    budget1 = (6 << 20) if big_vmem else (3 << 20)
    budget2 = (8 << 20) if big_vmem else (4 << 20)

    cdt = jnp.dtype(compute_dtype)
    y_dtype = cdt                          # bf16 pre-norm buffer on the fast path

    TH = _choose_th(H_out, Wd, Cp, N, budget1, row_bytes=4)
    TILE = TH * Wd                         # flat rows per tile (includes junk cols)
    PT = H_out // TH
    FLAT = G * Hd * Wd + a_max             # flattened input rows (+a_max pad, never used)

    TH2 = _choose_th(H_out, Wd, Cp, N, budget2, row_bytes=4 + y_dtype.itemsize)
    TILE2 = TH2 * Wd
    PT2 = H_out // TH2

    # ------------------ host glue: pure layout, no data inflation -------------------
    x = jnp.transpose(x_nchw, (0, 2, 3, 1)).astype(cdt)                      # NHWC, cdt
    xp = jnp.pad(x, ((0, 0), (1, 1), (1, 1), (0, 0)), mode="reflect")        # conv pad
    xp = jnp.pad(xp, ((0, 0), (0, max(0, s * Hd - Hp)),
                      (0, max(0, s * Wd - Wp)), (0, 0)))                     # never-read zeros
    groups = []
    for rh in range(s):
        for rw in range(s):
            groups.append(xp[:, rh::s, rw::s, :][:, :Hd, :Wd, :])
    xd = jnp.stack(groups, axis=1).reshape(N, G * Hd * Wd, C_in)
    xd = jnp.pad(xd, ((0, 0), (0, a_max), (0, 0)))                           # (N, FLAT, C_in)

    # weight (C_out, C_in, kh, kw) -> (16*C_in, Cp): single K-merged MXU operand
    w_flat = jnp.transpose(weight, (2, 3, 1, 0)).reshape(K, C_out)
    w_flat = jnp.pad(w_flat, ((0, 0), (0, Cp - C_out))).astype(cdt)
    bias_p = jnp.pad(bias, (0, Cp - C_out)).astype(jnp.float32).reshape(1, Cp)

    # ------------- pass 1: conv (single MXU matmul, K=16*C_in) + channel stats -------
    def conv_stats_kernel(x_ref, w_ref, b_ref, y_ref, st_ref):
        if PT == 1:
            base = 0                                   # fully static slicing
        else:
            base = pl.multiple_of(pl.program_id(1) * TILE, 8)
        taps = []
        for kh in range(KH):
            for kw in range(KW):
                dh, rh = kh // s, kh % s
                dw, rw = kw // s, kw % s
                g = rh * s + rw
                start = g * (Hd * Wd) + dh * Wd + dw + base
                taps.append(x_ref[0, pl.ds(start, TILE), :])   # (TILE, C_in) views
        lhs = jnp.concatenate(taps, axis=-1)                   # (TILE, 16*C_in)
        acc = jnp.dot(lhs, w_ref[...], preferred_element_type=jnp.float32)
        acc = acc + b_ref[...]           # conv bias (cancels in the norm; kept for exact y)
        if a_max > 0:
            # zero the Wd - W_out junk columns so they never pollute the norm statistics
            col = jax.lax.broadcasted_iota(jnp.int32, (TILE, 1), 0) % Wd
            acc = jnp.where(col < W_out, acc, 0.0)
        y_ref[0] = acc.astype(y_ref.dtype)
        st_ref[0, 0] = jnp.concatenate(
            [jnp.sum(acc, axis=0, keepdims=True),
             jnp.sum(acc * acc, axis=0, keepdims=True)], axis=0)

    vmem1 = _vmem_limit(
        [_block_vmem_bytes((FLAT, C_in), cdt),
         _block_vmem_bytes((K, Cp), cdt),
         _block_vmem_bytes((1, Cp), jnp.float32),
         _block_vmem_bytes((TILE, Cp), y_dtype),
         _block_vmem_bytes((2, Cp), jnp.float32)],
        cap,
        extra=2 * TILE * Cp * 4 + 2 * _block_vmem_bytes((TILE, K), cdt))

    y, stats = pl.pallas_call(
        conv_stats_kernel,
        out_shape=(jax.ShapeDtypeStruct((N, H_out * Wd, Cp), y_dtype),
                   jax.ShapeDtypeStruct((N, PT, 2, Cp), jnp.float32)),
        grid_spec=pltpu.PrefetchScalarGridSpec(
            num_scalar_prefetch=0,
            grid=(N, PT),
            in_specs=[
                pl.BlockSpec((1, FLAT, C_in), lambda n, p: (n, 0, 0)),
                pl.BlockSpec((K, Cp), lambda n, p: (0, 0)),
                pl.BlockSpec((1, Cp), lambda n, p: (0, 0)),
            ],
            out_specs=[
                pl.BlockSpec((1, TILE, Cp), lambda n, p: (n, p, 0)),
                pl.BlockSpec((1, 1, 2, Cp), lambda n, p: (n, p, 0, 0)),
            ],
        ),
        compiler_params=pltpu.CompilerParams(
            dimension_semantics=("parallel", "parallel"),
            vmem_limit_bytes=vmem1,
        ),
    )(xd, w_flat, bias_p)

    # --------- tiny glue: finalize InstanceNorm statistics (N*Cp scalars) ------------
    sums = jnp.sum(stats, axis=1)                              # (N, 2, Cp)
    mean = sums[:, 0, :] / P
    # Biased variance via E[y^2]-mean^2 in f32, clamped at 0.  Padded all-zero output
    # channels get var=0 -> scale=rsqrt(eps) ~ 316, harmless: they only multiply zeros.
    var = jnp.maximum(sums[:, 1, :] / P - mean * mean, 0.0)
    scale = jax.lax.rsqrt(var + eps)
    mean3 = mean[:, None, :].astype(jnp.float32)               # (N, 1, Cp)
    scale3 = scale[:, None, :].astype(jnp.float32)

    # --------- pass 2: (y - mean) * rsqrt(var+eps) + LeakyReLU(0.2) -------------------
    def norm_lrelu_kernel(y_ref, m_ref, sc_ref, o_ref):
        yn = (y_ref[0].astype(jnp.float32) - m_ref[0]) * sc_ref[0]
        o_ref[0] = jnp.where(yn >= 0, yn, 0.2 * yn)

    vmem2 = _vmem_limit(
        [_block_vmem_bytes((TILE2, Cp), y_dtype),
         _block_vmem_bytes((1, Cp), jnp.float32),
         _block_vmem_bytes((1, Cp), jnp.float32),
         _block_vmem_bytes((TILE2, Cp), jnp.float32)],
        cap,
        extra=2 * TILE2 * Cp * 4)

    out = pl.pallas_call(
        norm_lrelu_kernel,
        out_shape=jax.ShapeDtypeStruct((N, H_out * Wd, Cp), jnp.float32),
        grid_spec=pltpu.PrefetchScalarGridSpec(
            num_scalar_prefetch=0,
            grid=(N, PT2),
            in_specs=[
                pl.BlockSpec((1, TILE2, Cp), lambda n, p: (n, p, 0)),
                pl.BlockSpec((1, 1, Cp), lambda n, p: (n, 0, 0)),
                pl.BlockSpec((1, 1, Cp), lambda n, p: (n, 0, 0)),
            ],
            out_specs=pl.BlockSpec((1, TILE2, Cp), lambda n, p: (n, p, 0)),
        ),
        compiler_params=pltpu.CompilerParams(
            dimension_semantics=("parallel", "parallel"),
            vmem_limit_bytes=vmem2,
        ),
    )(y, mean3, scale3)

    # (N, H_out*Wd, Cp) -> strip junk columns / channel padding -> NCHW
    out = out.reshape(N, H_out, Wd, Cp)[:, :, :W_out, :C_out]
    return jnp.transpose(out, (0, 3, 1, 2))


block_forward = jax.jit(_block_forward_impl,
                        static_argnames=("stride", "compute_dtype"))


def _reference(x_nchw, weight, bias, stride):
    """Pure-JAX reference for the full Block (conv bias included)."""
    x = jnp.pad(x_nchw, ((0, 0), (0, 0), (1, 1), (1, 1)), mode="reflect")
    y = jax.lax.conv_general_dilated(
        x, weight, window_strides=(stride, stride), padding="VALID",
        dimension_numbers=("NCHW", "OIHW", "NCHW"),
    ) + bias[None, :, None, None]
    mean = jnp.mean(y, axis=(2, 3), keepdims=True)
    var = jnp.var(y, axis=(2, 3), keepdims=True)
    yn = (y - mean) / jnp.sqrt(var + 1e-5)
    return jnp.where(yn >= 0, yn, 0.2 * yn)


if __name__ == "__main__":
    # Small shapes consistent with the module: batch=2, in_c=4, out_c=8, spatial=16.
    N, C_in, C_out, H, W = 2, 4, 8, 16, 16

    key = jax.random.PRNGKey(0)
    kx, kw_, kb = jax.random.split(key, 3)
    x = jax.random.normal(kx, (N, C_in, H, W), dtype=jnp.float32)
    weight = jax.random.normal(kw_, (C_out, C_in, 4, 4), dtype=jnp.float32) * 0.1
    bias = jax.random.normal(kb, (C_out,), dtype=jnp.float32) * 0.1

    for stride in (2, 1):
        ref = jax.block_until_ready(_reference(x, weight, bias, stride))

        # exactness check of the kernel algorithm (f32 MXU path, f32 pre-norm buffer)
        out_f32 = jax.block_until_ready(
            block_forward(x, weight, bias, stride=stride, compute_dtype=jnp.float32))
        assert out_f32.shape == ref.shape, (out_f32.shape, ref.shape)
        err = float(jnp.max(jnp.abs(out_f32 - ref)))
        assert err < 1e-3, f"f32 path stride={stride} max err {err}"

        # fast path: bf16 MXU inputs, f32 accumulation, bf16 pre-norm buffer
        out_bf16 = jax.block_until_ready(
            block_forward(x, weight, bias, stride=stride, compute_dtype=jnp.bfloat16))
        err = float(jnp.max(jnp.abs(out_bf16 - ref)))
        assert err < 8e-2, f"bf16 path stride={stride} max err {err}"

    print("KERNEL_OK")
</pallas_src>

<mosaic_0001>
module attributes {stable_mosaic.version = 11 : i64} {
  func.func @norm_lrelu_kernel(%arg0: i32, %arg1: i32, %arg2: memref<1x72x128xf32, #tpu.memory_space<vmem>>, %arg3: memref<1x1x128xf32, #tpu.memory_space<vmem>>, %arg4: memref<1x1x128xf32, #tpu.memory_space<vmem>>, %arg5: memref<1x72x128xf32, #tpu.memory_space<vmem>>) attributes {dimension_semantics = [#tpu.dimension_semantics<parallel>, #tpu.dimension_semantics<parallel>], iteration_bounds = array<i64: 2, 1>, scalar_prefetch = 0 : i64, scratch_operands = 0 : i64, tpu.core_type = #tpu.core_type<tc>, window_params = [{transform_indices = @transform_0, window_bounds = array<i64: 1, 72, 128>}, {transform_indices = @transform_1, window_bounds = array<i64: 1, 1, 128>}, {transform_indices = @transform_2, window_bounds = array<i64: 1, 1, 128>}, {transform_indices = @transform_3, window_bounds = array<i64: 1, 72, 128>}]} {
    %c0 = arith.constant 0 : index
    %c0_0 = arith.constant 0 : index
    %c0_1 = arith.constant 0 : index
    %0 = vector.load %arg2[%c0, %c0_0, %c0_1] : memref<1x72x128xf32, #tpu.memory_space<vmem>>, vector<1x72x128xf32>
    %1 = vector.shape_cast %0 : vector<1x72x128xf32> to vector<72x128xf32>
    %c0_2 = arith.constant 0 : index
    %c0_3 = arith.constant 0 : index
    %c0_4 = arith.constant 0 : index
    %2 = vector.load %arg3[%c0_2, %c0_3, %c0_4] : memref<1x1x128xf32, #tpu.memory_space<vmem>>, vector<1x1x128xf32>
    %3 = vector.shape_cast %2 : vector<1x1x128xf32> to vector<1x128xf32>
    %4 = vector.broadcast %3 : vector<1x128xf32> to vector<72x128xf32>
    %5 = arith.subf %1, %4 : vector<72x128xf32>
    %c0_5 = arith.constant 0 : index
    %c0_6 = arith.constant 0 : index
    %c0_7 = arith.constant 0 : index
    %6 = vector.load %arg4[%c0_5, %c0_6, %c0_7] : memref<1x1x128xf32, #tpu.memory_space<vmem>>, vector<1x1x128xf32>
    %7 = vector.shape_cast %6 : vector<1x1x128xf32> to vector<1x128xf32>
    %8 = vector.broadcast %7 : vector<1x128xf32> to vector<72x128xf32>
    %9 = arith.mulf %5, %8 : vector<72x128xf32>
    %cst = arith.constant 0.000000e+00 : f32
    %10 = vector.broadcast %cst : f32 to vector<72x128xf32>
    %11 = arith.cmpf oge, %9, %10 : vector<72x128xf32>
    %cst_8 = arith.constant 2.000000e-01 : f32
    %12 = vector.broadcast %cst_8 : f32 to vector<72x128xf32>
    %13 = arith.mulf %12, %9 : vector<72x128xf32>
    %14 = arith.select %11, %9, %13 : vector<72x128xi1>, vector<72x128xf32>
    %c0_9 = arith.constant 0 : index
    %c0_10 = arith.constant 0 : index
    %c0_11 = arith.constant 0 : index
    %15 = vector.load %arg5[%c0_9, %c0_10, %c0_11] : memref<1x72x128xf32, #tpu.memory_space<vmem>>, vector<1x72x128xf32>
    %16 = vector.shape_cast %15 : vector<1x72x128xf32> to vector<72x128xf32>
    %17 = vector.shape_cast %14 : vector<72x128xf32> to vector<1x72x128xf32>
    tpu.vector_store %arg5[%c0_9, %c0_10, %c0_11], %17 {strides = array<i32>} : memref<1x72x128xf32, #tpu.memory_space<vmem>>, vector<1x72x128xf32>,
    return
  }
  func.func @transform_0(%arg0: i32, %arg1: i32) -> (i32, i32, i32) {
    %c0_i32 = arith.constant 0 : i32
    %c0_i32_0 = arith.constant 0 : i32
    return %arg0, %arg1, %c0_i32 : i32, i32, i32
  }
  func.func @transform_1(%arg0: i32, %arg1: i32) -> (i32, i32, i32) {
    %c0_i32 = arith.constant 0 : i32
    %c0_i32_0 = arith.constant 0 : i32
    %c0_i32_1 = arith.constant 0 : i32
    return %arg0, %c0_i32, %c0_i32_0 : i32, i32, i32
  }
  func.func @transform_2(%arg0: i32, %arg1: i32) -> (i32, i32, i32) {
    %c0_i32 = arith.constant 0 : i32
    %c0_i32_0 = arith.constant 0 : i32
    %c0_i32_1 = arith.constant 0 : i32
    return %arg0, %c0_i32, %c0_i32_0 : i32, i32, i32
  }
  func.func @transform_3(%arg0: i32, %arg1: i32) -> (i32, i32, i32) {
    %c0_i32 = arith.constant 0 : i32
    %c0_i32_0 = arith.constant 0 : i32
    return %arg0, %arg1, %c0_i32 : i32, i32, i32
  }
}

module attributes {stable_mosaic.version = 11 : i64} {
  func.func @conv_stats_kernel(%arg0: i32, %arg1: i32, %arg2: memref<1x325x4xf32, #tpu.memory_space<vmem>>, %arg3: memref<64x128xf32, #tpu.memory_space<vmem>>, %arg4: memref<1x128xf32, #tpu.memory_space<vmem>>, %arg5: memref<1x72x128xf32, #tpu.memory_space<vmem>>, %arg6: memref<1x1x2x128xf32, #tpu.memory_space<vmem>>) attributes {dimension_semantics = [#tpu.dimension_semantics<parallel>, #tpu.dimension_semantics<parallel>], iteration_bounds = array<i64: 2, 1>, scalar_prefetch = 0 : i64, scratch_operands = 0 : i64, tpu.core_type = #tpu.core_type<tc>, window_params = [{transform_indices = @transform_0, window_bounds = array<i64: 1, 325, 4>}, {pipeline_mode = #tpu.pipeline_mode<synchronous>, transform_indices = @transform_1, window_bounds = array<i64: 64, 128>}, {pipeline_mode = #tpu.pipeline_mode<synchronous>, transform_indices = @transform_2, window_bounds = array<i64: 1, 128>}, {transform_indices = @transform_3, window_bounds = array<i64: 1, 72, 128>}, {transform_indices = @transform_4, window_bounds = array<i64: 1, 1, 2, 128>}]} {
    %c0 = arith.constant 0 : index
    %c0_0 = arith.constant 0 : index
    %c0_1 = arith.constant 0 : index
    %0 = vector.load %arg2[%c0, %c0_0, %c0_1] : memref<1x325x4xf32, #tpu.memory_space<vmem>>, vector<1x72x4xf32>
    %1 = vector.shape_cast %0 : vector<1x72x4xf32> to vector<72x4xf32>
    %c0_2 = arith.constant 0 : index
    %c81 = arith.constant 81 : index
    %c0_3 = arith.constant 0 : index
    %2 = vector.load %arg2[%c0_2, %c81, %c0_3] : memref<1x325x4xf32, #tpu.memory_space<vmem>>, vector<1x72x4xf32>
    %3 = vector.shape_cast %2 : vector<1x72x4xf32> to vector<72x4xf32>
    %c0_4 = arith.constant 0 : index
    %c1 = arith.constant 1 : index
    %c0_5 = arith.constant 0 : index
    %4 = vector.load %arg2[%c0_4, %c1, %c0_5] : memref<1x325x4xf32, #tpu.memory_space<vmem>>, vector<1x72x4xf32>
    %5 = vector.shape_cast %4 : vector<1x72x4xf32> to vector<72x4xf32>
    %c0_6 = arith.constant 0 : index
    %c82 = arith.constant 82 : index
    %c0_7 = arith.constant 0 : index
    %6 = vector.load %arg2[%c0_6, %c82, %c0_7] : memref<1x325x4xf32, #tpu.memory_space<vmem>>, vector<1x72x4xf32>
    %7 = vector.shape_cast %6 : vector<1x72x4xf32> to vector<72x4xf32>
    %c0_8 = arith.constant 0 : index
    %c162 = arith.constant 162 : index
    %c0_9 = arith.constant 0 : index
    %8 = vector.load %arg2[%c0_8, %c162, %c0_9] : memref<1x325x4xf32, #tpu.memory_space<vmem>>, vector<1x72x4xf32>
    %9 = vector.shape_cast %8 : vector<1x72x4xf32> to vector<72x4xf32>
    %c0_10 = arith.constant 0 : index
    %c243 = arith.constant 243 : index
    %c0_11 = arith.constant 0 : index
    %10 = vector.load %arg2[%c0_10, %c243, %c0_11] : memref<1x325x4xf32, #tpu.memory_space<vmem>>, vector<1x72x4xf32>
    %11 = vector.shape_cast %10 : vector<1x72x4xf32> to vector<72x4xf32>
    %c0_12 = arith.constant 0 : index
    %c163 = arith.constant 163 : index
    %c0_13 = arith.constant 0 : index
    %12 = vector.load %arg2[%c0_12, %c163, %c0_13] : memref<1x325x4xf32, #tpu.memory_space<vmem>>, vector<1x72x4xf32>
    %13 = vector.shape_cast %12 : vector<1x72x4xf32> to vector<72x4xf32>
    %c0_14 = arith.constant 0 : index
    %c244 = arith.constant 244 : index
    %c0_15 = arith.constant 0 : index
    %14 = vector.load %arg2[%c0_14, %c244, %c0_15] : memref<1x325x4xf32, #tpu.memory_space<vmem>>, vector<1x72x4xf32>
    %15 = vector.shape_cast %14 : vector<1x72x4xf32> to vector<72x4xf32>
    %c0_16 = arith.constant 0 : index
    %c9 = arith.constant 9 : index
    %c0_17 = arith.constant 0 : index
    %16 = vector.load %arg2[%c0_16, %c9, %c0_17] : memref<1x325x4xf32, #tpu.memory_space<vmem>>, vector<1x72x4xf32>
    %17 = vector.shape_cast %16 : vector<1x72x4xf32> to vector<72x4xf32>
    %c0_18 = arith.constant 0 : index
    %c90 = arith.constant 90 : index
    %c0_19 = arith.constant 0 : index
    %18 = vector.load %arg2[%c0_18, %c90, %c0_19] : memref<1x325x4xf32, #tpu.memory_space<vmem>>, vector<1x72x4xf32>
    %19 = vector.shape_cast %18 : vector<1x72x4xf32> to vector<72x4xf32>
    %c0_20 = arith.constant 0 : index
    %c10 = arith.constant 10 : index
    %c0_21 = arith.constant 0 : index
    %20 = vector.load %arg2[%c0_20, %c10, %c0_21] : memref<1x325x4xf32, #tpu.memory_space<vmem>>, vector<1x72x4xf32>
    %21 = vector.shape_cast %20 : vector<1x72x4xf32> to vector<72x4xf32>
    %c0_22 = arith.constant 0 : index
    %c91 = arith.constant 91 : index
    %c0_23 = arith.constant 0 : index
    %22 = vector.load %arg2[%c0_22, %c91, %c0_23] : memref<1x325x4xf32, #tpu.memory_space<vmem>>, vector<1x72x4xf32>
    %23 = vector.shape_cast %22 : vector<1x72x4xf32> to vector<72x4xf32>
    %c0_24 = arith.constant 0 : index
    %c171 = arith.constant 171 : index
    %c0_25 = arith.constant 0 : index
    %24 = vector.load %arg2[%c0_24, %c171, %c0_25] : memref<1x325x4xf32, #tpu.memory_space<vmem>>, vector<1x72x4xf32>
    %25 = vector.shape_cast %24 : vector<1x72x4xf32> to vector<72x4xf32>
    %c0_26 = arith.constant 0 : index
    %c252 = arith.constant 252 : index
    %c0_27 = arith.constant 0 : index
    %26 = vector.load %arg2[%c0_26, %c252, %c0_27] : memref<1x325x4xf32, #tpu.memory_space<vmem>>, vector<1x72x4xf32>
    %27 = vector.shape_cast %26 : vector<1x72x4xf32> to vector<72x4xf32>
    %c0_28 = arith.constant 0 : index
    %c172 = arith.constant 172 : index
    %c0_29 = arith.constant 0 : index
    %28 = vector.load %arg2[%c0_28, %c172, %c0_29] : memref<1x325x4xf32, #tpu.memory_space<vmem>>, vector<1x72x4xf32>
    %29 = vector.shape_cast %28 : vector<1x72x4xf32> to vector<72x4xf32>
    %c0_30 = arith.constant 0 : index
    %c253 = arith.constant 253 : index
    %c0_31 = arith.constant 0 : index
    %30 = vector.load %arg2[%c0_30, %c253, %c0_31] : memref<1x325x4xf32, #tpu.memory_space<vmem>>, vector<1x72x4xf32>
    %31 = vector.shape_cast %30 : vector<1x72x4xf32> to vector<72x4xf32>
    %32 = tpu.concatenate %1, %3, %5, %7, %9, %11, %13, %15, %17, %19, %21, %23, %25, %27, %29, %31 in 1 : vector<72x4xf32>, vector<72x4xf32>, vector<72x4xf32>, vector<72x4xf32>, vector<72x4xf32>, vector<72x4xf32>, vector<72x4xf32>, vector<72x4xf32>, vector<72x4xf32>, vector<72x4xf32>, vector<72x4xf32>, vector<72x4xf32>, vector<72x4xf32>, vector<72x4xf32>, vector<72x4xf32>, vector<72x4xf32> -> vector<72x64xf32>
    %c0_32 = arith.constant 0 : index
    %c0_33 = arith.constant 0 : index
    %33 = vector.load %arg3[%c0_32, %c0_33] : memref<64x128xf32, #tpu.memory_space<vmem>>, vector<64x128xf32>
    %cst = arith.constant dense<0.000000e+00> : vector<72x128xf32>
    %34 = tpu.matmul %32, %33, %cst {dimension_numbers = #tpu.dot_dimension_numbers<[1], [0], [0], [1], [0, 0, 1, 1], [], []>} : vector<72x64xf32>, vector<64x128xf32>, vector<72x128xf32> -> vector<72x128xf32>
    %c0_34 = arith.constant 0 : index
    %c0_35 = arith.constant 0 : index
    %35 = vector.load %arg4[%c0_34, %c0_35] : memref<1x128xf32, #tpu.memory_space<vmem>>, vector<1x128xf32>
    %36 = vector.broadcast %35 : vector<1x128xf32> to vector<72x128xf32>
    %37 = arith.addf %34, %36 : vector<72x128xf32>
    %38 = tpu.iota {dimensions = array<i32: 0>} : vector<72x1xi32>
    %c9_i32 = arith.constant 9 : i32
    %c0_i32 = arith.constant 0 : i32
    %39 = arith.cmpi eq, %c9_i32, %c0_i32 : i32
    %c1_i32 = arith.constant 1 : i32
    %40 = arith.select %39, %c1_i32, %c9_i32 : i32
    %41 = vector.broadcast %40 : i32 to vector<72x1xi32>
    %42 = arith.remsi %38, %41 : vector<72x1xi32>
    %c0_i32_36 = arith.constant 0 : i32
    %43 = vector.broadcast %c0_i32_36 : i32 to vector<72x1xi32>
    %44 = arith.cmpi ne, %42, %43 : vector<72x1xi32>
    %c0_i32_37 = arith.constant 0 : i32
    %45 = vector.broadcast %c0_i32_37 : i32 to vector<72x1xi32>
    %46 = arith.cmpi slt, %42, %45 : vector<72x1xi32>
    %c0_i32_38 = arith.constant 0 : i32
    %47 = arith.cmpi slt, %40, %c0_i32_38 : i32
    %48 = vector.broadcast %47 : i1 to vector<72x1xi1>
    %49 = vector.broadcast %48 : vector<72x1xi1> to vector<72x1xi1>
    %50 = arith.xori %46, %49 : vector<72x1xi1>
    %51 = arith.andi %50, %44 : vector<72x1xi1>
    %52 = vector.broadcast %40 : i32 to vector<72x1xi32>
    %53 = arith.addi %42, %52 : vector<72x1xi32>
    %54 = arith.select %51, %53, %42 : vector<72x1xi1>, vector<72x1xi32>
    %c8_i32 = arith.constant 8 : i32
    %55 = vector.broadcast %c8_i32 : i32 to vector<72x1xi32>
    %56 = arith.cmpi slt, %54, %55 : vector<72x1xi32>
    %cst_39 = arith.constant 0.000000e+00 : f32
    %57 = vector.shape_cast %56 : vector<72x1xi1> to vector<72x1xi1>
    %58 = vector.broadcast %57 : vector<72x1xi1> to vector<72x128xi1>
    %59 = vector.broadcast %cst_39 : f32 to vector<72x128xf32>
    %60 = arith.select %58, %37, %59 : vector<72x128xi1>, vector<72x128xf32>
    %c0_40 = arith.constant 0 : index
    %c0_41 = arith.constant 0 : index
    %c0_42 = arith.constant 0 : index
    %61 = vector.load %arg5[%c0_40, %c0_41, %c0_42] : memref<1x72x128xf32, #tpu.memory_space<vmem>>, vector<1x72x128xf32>
    %62 = vector.shape_cast %61 : vector<1x72x128xf32> to vector<72x128xf32>
    %63 = vector.shape_cast %60 : vector<72x128xf32> to vector<1x72x128xf32>
    tpu.vector_store %arg5[%c0_40, %c0_41, %c0_42], %63 {strides = array<i32>} : memref<1x72x128xf32, #tpu.memory_space<vmem>>, vector<1x72x128xf32>,
    %cst_43 = arith.constant dense<0.000000e+00> : vector<128xf32>
    %64 = vector.multi_reduction <add>, %60, %cst_43 [0] : vector<72x128xf32> to vector<128xf32>
    %65 = vector.shape_cast %64 : vector<128xf32> to vector<1x128xf32>
    %66 = arith.mulf %60, %60 : vector<72x128xf32>
    %cst_44 = arith.constant dense<0.000000e+00> : vector<128xf32>
    %67 = vector.multi_reduction <add>, %66, %cst_44 [0] : vector<72x128xf32> to vector<128xf32>
    %68 = vector.shape_cast %67 : vector<128xf32> to vector<1x128xf32>
    %69 = tpu.concatenate %65, %68 in 0 : vector<1x128xf32>, vector<1x128xf32> -> vector<2x128xf32>
    %c0_45 = arith.constant 0 : index
    %c0_46 = arith.constant 0 : index
    %c0_47 = arith.constant 0 : index
    %c0_48 = arith.constant 0 : index
    %70 = vector.load %arg6[%c0_45, %c0_46, %c0_47, %c0_48] : memref<1x1x2x128xf32, #tpu.memory_space<vmem>>, vector<1x1x2x128xf32>
    %71 = vector.shape_cast %70 : vector<1x1x2x128xf32> to vector<2x128xf32>
    %72 = vector.shape_cast %69 : vector<2x128xf32> to vector<1x1x2x128xf32>
    tpu.vector_store %arg6[%c0_45, %c0_46, %c0_47, %c0_48], %72 {strides = array<i32>} : memref<1x1x2x128xf32, #tpu.memory_space<vmem>>, vector<1x1x2x128xf32>,
    return
  }
  func.func @transform_0(%arg0: i32, %arg1: i32) -> (i32, i32, i32) {
    %c0_i32 = arith.constant 0 : i32
    %c0_i32_0 = arith.constant 0 : i32
    %c0_i32_1 = arith.constant 0 : i32
    return %arg0, %c0_i32, %c0_i32_0 : i32, i32, i32
  }
  func.func @transform_1(%arg0: i32, %arg1: i32) -> (i32, i32) {
    %c0_i32 = arith.constant 0 : i32
    %c0_i32_0 = arith.constant 0 : i32
    %c0_i32_1 = arith.constant 0 : i32
    return %c0_i32, %c0_i32_0 : i32, i32
  }
  func.func @transform_2(%arg0: i32, %arg1: i32) -> (i32, i32) {
    %c0_i32 = arith.constant 0 : i32
    %c0_i32_0 = arith.constant 0 : i32
    %c0_i32_1 = arith.constant 0 : i32
    return %c0_i32, %c0_i32_0 : i32, i32
  }
  func.func @transform_3(%arg0: i32, %arg1: i32) -> (i32, i32, i32) {
    %c0_i32 = arith.constant 0 : i32
    %c0_i32_0 = arith.constant 0 : i32
    return %arg0, %arg1, %c0_i32 : i32, i32, i32
  }
  func.func @transform_4(%arg0: i32, %arg1: i32) -> (i32, i32, i32, i32) {
    %c0_i32 = arith.constant 0 : i32
    %c0_i32_0 = arith.constant 0 : i32
    %c0_i32_1 = arith.constant 0 : i32
    return %arg0, %arg1, %c0_i32, %c0_i32_0 : i32, i32, i32, i32
  }
}

</mosaic_0001>

<bundles_post_ra>
// kernel: _block_forward_impl.3
= control target key start
LH: loop header
LB: loop body
LE: loop exit
PB: predicated region body
PF: predicated region fallthrough
CT: control target
= control target key end

     0   :  { %s500_s12 = smov 0   ;;  %s502_s13 = smov 0   ;;  %s559_s0 = inlined_call_operand.vmem [shape: f32[2,72,128], index: 0, kind: input, shape index: {}]   ;;  %s560_s1 = inlined_call_operand.vmem [shape: f32[2,1,128], index: 1, kind: input, shape index: {}]   ;;  %s561_s2 = inlined_call_operand.vmem [shape: f32[2,1,128], index: 2, kind: input, shape index: {}]   ;;  %s562_s3 = inlined_call_operand.vmem [shape: f32[2,72,128], index: 3, kind: output, shape index: {}]  }
   0x1   :  { %s504_s14 = smov 0  }
   0x2 LB: > { %s25_s15 = sadd.s32 1, %s474_s13  ;;  %p424_p0 = scmp.ge.s32.totalorder %s478_s14, 1  ;;  %s478_s14 = sphi %s504_s14, %s13_s14   ;;  %s474_s13 = sphi %s502_s13, %s564_s13   ;;  %s470_s12 = sphi %s500_s12, %s563_s12  }
   0x3   : > { %p27_p1 = scmp.ge.s32.totalorder %s25_s15, 2  ;;  %p174_p2 = scmp.lt.s32.totalorder %s478_s14, 3 }
   0x5   : > { %s566_s15 = smov (%p27_p1, %s25_s15), 0  ;;  %p175_p3 = pnand %p424_p0, %p174_p2 }
   0x6   : > { %p213_p4 = scmp.lt.s32.totalorder (!%p175_p3), %s470_s12, 1 }
   0x7   : > { %178 = sbr.rel (%p175_p3) target bundleno = 36 (0x24), region = 32 }
   0xe   : > { %s568_s12 = smov (!%p213_p4, %s470_s12), 1 }
   0xf   : > { %s431_s16 = smul.u32 72, %s568_s12  ;;  %s224_s19 = scalar_lea.vmem %s560_s1, %s568_s12 }
  0x10   : > { %s227_s22 = scalar_lea.vmem %s561_s2, %s568_s12  ;;  %v427_v0 = vld [vmem:[%s224_s19] ss:$0 sm:$0xff] }
  0x11   : > { %s220_s25 = scalar_lea.vmem %s559_s0, %s431_s16  ;;  %v428_v1 = vld [vmem:[%s227_s22] ss:$0 sm:$0xff]  ;;  %s539_s28 = scalar_lea.vmem %s562_s3, %s431_s16 }
  0x12   : > { %v238_v2 = vld [vmem:[%s220_s25] sm:$0xff]  ;;  %v239_v3 = vld [vmem:[%s220_s25 + $0x8] sm:$0xff]  ;;  %v240_v4 = vld [vmem:[%s220_s25 + $0x10] sm:$0xff] }
  0x13   : > { %v254_v5 = vsub.f32 %v238_v2, %v427_v0  ;;  %v255_v6 = vsub.f32 %v239_v3, %v427_v0  ;;  %v256_v7 = vsub.f32 %v240_v4, %v427_v0  ;;  %v241_v8 = vld [vmem:[%s220_s25 + $0x18] sm:$0xff]  ;;  %v242_v9 = vld [vmem:[%s220_s25 + $0x20] sm:$0xff]  ;;  %v243_v10 = vld [vmem:[%s220_s25 + $0x28] sm:$0xff] }
  0x14   : > { %v257_v11 = vsub.f32 %v241_v8, %v427_v0  ;;  %v258_v12 = vsub.f32 %v242_v9, %v427_v0  ;;  %v259_v13 = vsub.f32 %v243_v10, %v427_v0  ;;  %v244_v14 = vld [vmem:[%s220_s25 + $0x30] sm:$0xff]  ;;  %v245_v15 = vld [vmem:[%s220_s25 + $0x38] sm:$0xff]  ;;  %v246_v24 = vld [vmem:[%s220_s25 + $0x40] sm:$0xff] }
  0x15   : > { %v270_v16 = vmul.f32 %v428_v1, %v254_v5  ;;  %v271_v17 = vmul.f32 %v428_v1, %v255_v6  ;;  %v272_v18 = vmul.f32 %v428_v1, %v256_v7  ;;  %v260_v19 = vsub.f32 %v244_v14, %v427_v0 }
  0x16   : > { %v273_v20 = vmul.f32 %v428_v1, %v257_v11  ;;  %v274_v21 = vmul.f32 %v428_v1, %v258_v12  ;;  %v275_v22 = vmul.f32 %v428_v1, %v259_v13  ;;  %v261_v23 = vsub.f32 %v245_v15, %v427_v0 }
  0x17   : > { %vm279_vm0 = vcmp.ge.f32.partialorder %v270_v16, 0.0  ;;  %v288_v25 = vmul.f32 0.2, %v270_v16  ;;  %vm280_vm1 = vcmp.ge.f32.partialorder %v271_v17, 0.0  ;;  %v289_v26 = vmul.f32 0.2, %v271_v17 }
  0x18   : > { %vm281_vm2 = vcmp.ge.f32.partialorder %v272_v18, 0.0  ;;  %v290_v27 = vmul.f32 0.2, %v272_v18  ;;  %vm282_vm3 = vcmp.ge.f32.partialorder %v273_v20, 0.0  ;;  %v291_v28 = vmul.f32 0.2, %v273_v20 }
  0x19   : > { %v297_v29 = vsel %vm279_vm0, %v270_v16, %v288_v25  ;;  %v298_v30 = vsel %vm280_vm1, %v271_v17, %v289_v26  ;;  %vm283_vm4 = vcmp.ge.f32.partialorder %v274_v21, 0.0  ;;  %v292_v31 = vmul.f32 0.2, %v274_v21 }
  0x1a   : > { %306 = vst [vmem:[%s539_s28] sm:$0xff] %v297_v29  ;;  %307 = vst [vmem:[%s539_s28 + $0x8] sm:$0xff] %v298_v30  ;;  %v299_v32 = vsel %vm281_vm2, %v272_v18, %v290_v27  ;;  %v300_v33 = vsel %vm282_vm3, %v273_v20, %v291_v28  ;;  %vm284_vm5 = vcmp.ge.f32.partialorder %v275_v22, 0.0  ;;  %v293_v34 = vmul.f32 0.2, %v275_v22 }
  0x1b   : > { %308 = vst [vmem:[%s539_s28 + $0x10] sm:$0xff] %v299_v32  ;;  %309 = vst [vmem:[%s539_s28 + $0x18] sm:$0xff] %v300_v33  ;;  %v301_v35 = vsel %vm283_vm4, %v274_v21, %v292_v31  ;;  %v276_v36 = vmul.f32 %v428_v1, %v260_v19  ;;  %v277_v37 = vmul.f32 %v428_v1, %v261_v23 }
  0x1c   : > { %v262_v38 = vsub.f32 %v246_v24, %v427_v0  ;;  %310 = vst [vmem:[%s539_s28 + $0x20] sm:$0xff] %v301_v35  ;;  %v302_v39 = vsel %vm284_vm5, %v275_v22, %v293_v34 }
  0x1d   : > { %311 = vst [vmem:[%s539_s28 + $0x28] sm:$0xff] %v302_v39  ;;  %vm285_vm6 = vcmp.ge.f32.partialorder %v276_v36, 0.0  ;;  %v294_v40 = vmul.f32 0.2, %v276_v36  ;;  %vm286_vm7 = vcmp.ge.f32.partialorder %v277_v37, 0.0 }
  0x1e   : > { %v295_v41 = vmul.f32 0.2, %v277_v37  ;;  %v278_v42 = vmul.f32 %v428_v1, %v262_v38 }
  0x1f   : > { %v303_v43 = vsel %vm285_vm6, %v276_v36, %v294_v40 }
  0x20   : > { %v304_v44 = vsel %vm286_vm7, %v277_v37, %v295_v41  ;;  %312 = vst [vmem:[%s539_s28 + $0x30] sm:$0xff] %v303_v43  ;;  %vm287_vm8 = vcmp.ge.f32.partialorder %v278_v42, 0.0  ;;  %v296_v45 = vmul.f32 0.2, %v278_v42 }
  0x21   : > { %313 = vst [vmem:[%s539_s28 + $0x38] sm:$0xff] %v304_v44 }
  0x22   : > { %v305_v46 = vsel %vm287_vm8, %v278_v42, %v296_v45 }
  0x23   : > { %314 = vst [vmem:[%s539_s28 + $0x40] sm:$0xff] %v305_v46 }
  0x24 PF: > { %s13_s14 = sadd.s32 1, %s478_s14   ;;  %s563_s12 = smov %s474_s13 }
  0x25   : > { %p10_p5 = scmp.ge.s32.totalorder %s13_s14, 4   ;;  %s564_s13 = smov %s566_s15 }
  0x27   :  { %12 = sbr.rel (!%p10_p5) target bundleno = 2 (0x2), region = 68 }

// kernel: _block_forward_impl.2
= control target key start
LH: loop header
LB: loop body
LE: loop exit
PB: predicated region body
PF: predicated region fallthrough
CT: control target
= control target key end

     0   :  { %s1753_s15 = smov 0   ;;  %s1755_s16 = smov 0   ;;  %s2470_s0 = inlined_call_operand.vmem [shape: f32[2,325,4], index: 0, kind: input, shape index: {}]   ;;  %s2471_s1 = inlined_call_operand.vmem [shape: f32[64,128], index: 1, kind: input, shape index: {}]   ;;  %s2472_s2 = inlined_call_operand.vmem [shape: f32[1,128], index: 2, kind: input, shape index: {}]   ;;  %s2473_s3 = inlined_call_operand.vmem [shape: f32[2,72,128], index: 3, kind: output, shape index: {0}]   ;;  %s2474_s4 = inlined_call_operand.vmem [shape: f32[2,1,2,128], index: 4, kind: output, shape index: {1}]  }
   0x1   :  { %s1757_s17 = smov 0  }
   0x2 LB: > { %s27_s18 = sadd.s32 1, %s1704_s16  ;;  %p1528_p0 = scmp.ge.s32.totalorder %s1708_s17, 1  ;;  %s1708_s17 = sphi %s1757_s17, %s15_s17   ;;  %s1704_s16 = sphi %s1755_s16, %s2490_s16   ;;  %s1700_s15 = sphi %s1753_s15, %s2489_s15  }
   0x3   : > { %p29_p1 = scmp.ge.s32.totalorder %s27_s18, 2  ;;  %p181_p2 = scmp.lt.s32.totalorder %s1708_s17, 3 }
   0x5   : > { %s2492_s18 = smov (%p29_p1, %s27_s18), 0  ;;  %p182_p3 = pnand %p1528_p0, %p181_p2 }
   0x6   : > { %p218_p4 = scmp.lt.s32.totalorder (!%p182_p3), %s1700_s15, 1  ;;  %s1710_s23 = smov (!%p182_p3), 12   ;;  %v1010_v22 = vld [vmem:[%s2471_s1] sm:$0xff] (!%p182_p3)  ;;  %v1011_v23 = vld [vmem:[%s2471_s1 + $0x8] sm:$0xff] (!%p182_p3)  ;;  %v1722_v26 = vmov (!%p182_p3), 0.0|0.0   ;;  %v1012_v27 = vld [vmem:[%s2471_s1 + $0x10] sm:$0xff] (!%p182_p3) }
   0x7   : > { %185 = sbr.rel (%p182_p3) target bundleno = 637 (0x27d), region = 32  ;;  %s1711_s24 = smov (!%p182_p3), 4   ;;  %v1605_v24 = vpack.c.bf16 (!%p182_p3), %v1011_v23, %v1010_v22  ;;  %1604 = vmatprep.subr.bf16.mxu0 (!%p182_p3), %v1722_v26  ;;  %1616 = vmatprep.subr.bf16.mxu1 (!%p182_p3), %v1722_v26  ;;  %v1013_v28 = vld [vmem:[%s2471_s1 + $0x18] sm:$0xff] (!%p182_p3)  ;;  %v1014_v31 = vld [vmem:[%s2471_s1 + $0x20] sm:$0xff] (!%p182_p3)  ;;  %v1015_v32 = vld [vmem:[%s2471_s1 + $0x28] sm:$0xff] (!%p182_p3)  ;;  %vm1724_vm0 = vmmov (!%p182_p3), 0  }
   0x8   : > { %s1712_s25 = smov (!%p182_p3), 16   ;;  %s1713_s26 = smov (!%p182_p3), 8   ;;  %v1608_v29 = vpack.c.bf16 (!%p182_p3), %v1013_v28, %v1012_v27  ;;  %v1611_v33 = vpack.c.bf16 (!%p182_p3), %v1015_v32, %v1014_v31  ;;  %v1016_v36 = vld [vmem:[%s2471_s1 + $0x30] sm:$0xff] (!%p182_p3)  ;;  %v1017_v37 = vld [vmem:[%s2471_s1 + $0x38] sm:$0xff] (!%p182_p3)  ;;  %v1725_v41 = vmov (!%p182_p3), 0.0   ;;  %vm860_vm1 = vcmask (!%p182_p3), 31744  }
   0x9   : > { %s1714_s27 = smov (!%p182_p3), 20   ;;  %s1715_s28 = smov (!%p182_p3), 24   ;;  %1606 = vmatpush3.bf16.msra.mxu0 (!%p182_p3), %v1605_v24  ;;  %1620 = vmatpush3.bf16.msra.mxu1 (!%p182_p3), %v1605_v24  ;;  %v1614_v38 = vpack.c.bf16 (!%p182_p3), %v1017_v37, %v1016_v36  ;;  %vm870_vm2 = vcmask (!%p182_p3), 64512   ;;  %vm2476_vm3 = vcmask (!%p182_p3), 97280   ;;  %vm890_vm4 = vcmask (!%p182_p3), 130048  }
   0xa   : > { %s1716_s29 = smov (!%p182_p3), 28   ;;  %s1717_s30 = smov (!%p182_p3), 32   ;;  %1607 = vmatprep.subr.bf16.mxu0 (!%p182_p3), %v1722_v26  ;;  %1617 = vmatprep.subr.bf16.mxu1 (!%p182_p3), %v1722_v26  ;;  %vm900_vm5 = vcmask (!%p182_p3), 162816   ;;  %vm2477_vm6 = vcmask (!%p182_p3), 195584   ;;  %vm920_vm7 = vcmask (!%p182_p3), 228352   ;;  %vm930_vm8 = vcmask (!%p182_p3), 261120  }
   0xb   : > { %s1718_s5 = smov (!%p182_p3), 36   ;;  %s1719_s6 = smov (!%p182_p3), 40   ;;  %1577 = vmatprep.mubr.msk.f32.mxu0 (!%p182_p3), %vm1724_vm0, %v1725_v41  ;;  %1592 = vmatprep.mubr.msk.f32.mxu1 (!%p182_p3), %vm1724_vm0, %v1725_v41  ;;  %vm940_vm9 = vcmask (!%p182_p3), 293888   ;;  %vm950_vm10 = vcmask (!%p182_p3), 326656   ;;  %vm960_vm11 = vcmask (!%p182_p3), 359424   ;;  %vm2475_vm12 = vcmask (!%p182_p3), 392192  }
   0xc   : > { %s1720_s7 = smov (!%p182_p3), 44   ;;  %s1721_s8 = smov (!%p182_p3), 48   ;;  %vm980_vm13 = vcmask (!%p182_p3), 424960   ;;  %vm990_vm14 = vcmask (!%p182_p3), 457728   ;;  %vm1000_vm15 = vcmask (!%p182_p3), 490496  }
   0xd   : > { %1609 = vmatpush3.bf16.msra.mxu0 (!%p182_p3), %v1608_v29  ;;  %1621 = vmatpush3.bf16.msra.mxu1 (!%p182_p3), %v1608_v29  ;;  %s1723_s12 = smov (!%p182_p3), 52   ;;  %s1726_s21 = smov (!%p182_p3), 56  }
   0xe   : > { %s2494_s15 = smov (!%p218_p4, %s1700_s15), 1  ;;  %1610 = vmatprep.subr.bf16.mxu0 %v1722_v26  ;;  %1618 = vmatprep.subr.bf16.mxu1 %v1722_v26  ;;  %s1727_s9 = smov 60  }
   0xf   : > { %s1624_s19 = smul.u32 328, %s2494_s15 }
  0x11   : > { %s1777_s22 = scalar_lea.vmem %s2470_s0, %s1624_s19  ;;  %1612 = vmatpush3.bf16.msra.mxu0 %v1611_v33  ;;  %1622 = vmatpush3.bf16.msra.mxu1 %v1611_v33 }
  0x12   : > { %v267_v0 = vld [vmem:[%s1777_s22 + $0x52] sm:$0xff]  ;;  %v276_v2 = vld [vmem:[%s1777_s22 + $0xa2] sm:$0xff]  ;;  %v268_v9 = vld [vmem:[%s1777_s22 + $0x5a] sm:$0xff]  ;;  %1613 = vmatprep.subr.bf16.mxu0 %v1722_v26  ;;  %1619 = vmatprep.subr.bf16.mxu1 %v1722_v26 }
  0x13   : > { %v249_v1 = vld [vmem:[%s1777_s22 + $0x51] sm:$0xff]  ;;  %433 = vrot.lane.b32.xlu1 %v267_v0, %s1710_s23  ;;  %v258_v3 = vld [vmem:[%s1777_s22 + $0x1] sm:$0xff]  ;;  %v250_v5 = vld [vmem:[%s1777_s22 + $0x59] sm:$0xff] }
  0x14   : > { %361 = vrot.lane.b32.xlu0 %v249_v1, %s1711_s24  ;;  %v285_v4 = vld [vmem:[%s1777_s22 + $0xf3] sm:$0xff]  ;;  %v294_v6 = vld [vmem:[%s1777_s22 + $0xa3] sm:$0xff]  ;;  %v286_v11 = vld [vmem:[%s1777_s22 + $0xfb] sm:$0xff] }
  0x15   : > { %v259_v7 = vld [vmem:[%s1777_s22 + $0x9] sm:$0xff]  ;;  %v303_v8 = vld [vmem:[%s1777_s22 + $0xf4] sm:$0xff]  ;;  %v251_v12 = vld [vmem:[%s1777_s22 + $0x61] sm:$0xff]  ;;  %1615 = vmatpush3.bf16.msra.mxu0 %v1614_v38  ;;  %1623 = vmatpush3.bf16.msra.mxu1 %v1614_v38 }
  0x16   : > { %v277_v10 = vld [vmem:[%s1777_s22 + $0xaa] sm:$0xff]  ;;  %v304_v16 = vld [vmem:[%s1777_s22 + $0xfc] sm:$0xff]  ;;  %v278_v18 = vld [vmem:[%s1777_s22 + $0xb2] sm:$0xff] }
  0x17   : > { %469 = vrot.lane.b32.xlu1 %v276_v2, %s1712_s25  ;;  %v260_v13 = vld [vmem:[%s1777_s22 + $0x11] sm:$0xff]  ;;  %v269_v17 = vld [vmem:[%s1777_s22 + $0x62] sm:$0xff]  ;;  %v254_v20 = vld [vmem:[%s1777_s22 + $0x79] sm:$0xff] }
  0x18   : > { %397 = vrot.lane.b32.xlu0 %v258_v3, %s1713_s26  ;;  %v314_v14 = vld [vmem:[%s1777_s22 + $0xa] sm:$0xff]  ;;  %v323_v19 = vld [vmem:[%s1777_s22 + $0x5b] sm:$0xff]  ;;  %v296_v34 = vld [vmem:[%s1777_s22 + $0xb3] sm:$0xff] }
  0x19   : > { %v295_v15 = vld [vmem:[%s1777_s22 + $0xab] sm:$0xff]  ;;  %v287_v25 = vld [vmem:[%s1777_s22 + $0x103] sm:$0xff]  ;;  %v261_v30 = vld [vmem:[%s1777_s22 + $0x19] sm:$0xff] }
  0x1a   : > { %v252_v21 = vld [vmem:[%s1777_s22 + $0x69] sm:$0xff]  ;;  %v315_v40 = vld [vmem:[%s1777_s22 + $0x12] sm:$0xff]  ;;  %v1873_v42 = vld [vmem:[%s1777_s22 + $0x7a] sm:$0xff] }
  0x1b   : > { %505 = vrot.lane.b32.xlu1 %v285_v4, %s1714_s27  ;;  %v1853_v35 = vld [vmem:[%s1777_s22 + $0x29] sm:$0xff]  ;;  %v279_v46 = vld [vmem:[%s1777_s22 + $0xba] sm:$0xff]  ;;  %v253_v49 = vld [vmem:[%s1777_s22 + $0x71] sm:$0xff] }
  0x1c   : > { %363 = vrot.lane.b32.xlu0 %v250_v5, %s1711_s24  ;;  %v334_v39 = vld [vmem:[%s1777_s22 + $0xac] sm:$0xff]  ;;  %v324_v44 = vld [vmem:[%s1777_s22 + $0x63] sm:$0xff]  ;;  %v290_v52 = vld [vmem:[%s1777_s22 + $0x11b] sm:$0xff] }
  0x1d   : > { %v270_v43 = vld [vmem:[%s1777_s22 + $0x6a] sm:$0xff]  ;;  %v343_v47 = vld [vmem:[%s1777_s22 + $0xfd] sm:$0xff]  ;;  %v271_v58 = vld [vmem:[%s1777_s22 + $0x72] sm:$0xff] }
  0x1e   : > { %v305_v45 = vld [vmem:[%s1777_s22 + $0x104] sm:$0xff]  ;;  %v297_v54 = vld [vmem:[%s1777_s22 + $0xbb] sm:$0xff]  ;;  %v264_v55 = vld [vmem:[%s1777_s22 + $0x31] sm:$0xff] }
  0x1f   : > { %541 = vrot.lane.b32.xlu1 %v294_v6, %s1715_s28  ;;  %v281_v48 = vld [vmem:[%s1777_s22 + $0xca] sm:$0xff]  ;;  %v255_v51 = vld [vmem:[%s1777_s22 + $0x81] sm:$0xff]  ;;  %v335_v59 = vld [vmem:[%s1777_s22 + $0xb4] sm:$0xff] }
  0x20   : > { %399 = vrot.lane.b32.xlu0 %v259_v7, %s1713_s26  ;;  %v288_v50 = vld [vmem:[%s1777_s22 + $0x10b] sm:$0xff]  ;;  %v262_v53 = vld [vmem:[%s1777_s22 + $0x21] sm:$0xff]  ;;  %v307_v32 = vld [vmem:[%s1777_s22 + $0x114] sm:$0xff] }
  0x21   : > { %v316_v56 = vld [vmem:[%s1777_s22 + $0x1a] sm:$0xff]  ;;  %v1909_v57 = vld [vmem:[%s1777_s22 + $0xcb] sm:$0xff]  ;;  %v273_v61 = vld [vmem:[%s1777_s22 + $0x82] sm:$0xff] }
  0x22   : > { %v306_v60 = vld [vmem:[%s1777_s22 + $0x10c] sm:$0xff]  ;;  %v1924_v63 = vld [vmem:[%s1777_s22 + $0x11c] sm:$0xff]  ;;  %v2009_v38 = vld [vmem:[%s1777_s22 + $0x124] sm:$0xff] }
  0x23   : > { %577 = vrot.lane.b32.xlu1 %v303_v8, %s1716_s29  ;;  %v325_v62 = vld [vmem:[%s1777_s22 + $0x6b] sm:$0xff]  ;;  %v280_v2 = vld [vmem:[%s1777_s22 + $0xc2] sm:$0xff]  ;;  %v326_v37 = vld [vmem:[%s1777_s22 + $0x73] sm:$0xff] }
  0x24   : > { %435 = vrot.lane.b32.xlu0 %v268_v9, %s1710_s23  ;;  %v344_v3 = vld [vmem:[%s1777_s22 + $0x105] sm:$0xff]  ;;  %v282_v6 = vld [vmem:[%s1777_s22 + $0xd2] sm:$0xff]  ;;  %v336_v28 = vld [vmem:[%s1777_s22 + $0xbc] sm:$0xff] }
  0x25   : > { %v317_v24 = vld [vmem:[%s1777_s22 + $0x22] sm:$0xff]  ;;  %v319_v29 = vld [vmem:[%s1777_s22 + $0x32] sm:$0xff]  ;;  %v274_v33 = vld [vmem:[%s1777_s22 + $0x8a] sm:$0xff] }
  0x27   : > { %605 = vrot.lane.b32.xlu1 %v259_v7, %s1717_s30 }
  0x28   : > { %471 = vrot.lane.b32.xlu0 %v277_v10, %s1712_s25 }
  0x2b   : > { %507 = vrot.lane.b32.xlu1 %v286_v11, %s1714_s27  ;;  %v289_v11 = vld [vmem:[%s1777_s22 + $0x113] sm:$0xff] }
  0x2c   : > { %365 = vrot.lane.b32.xlu0 %v251_v12, %s1711_s24  ;;  %v256_v12 = vld [vmem:[%s1777_s22 + $0x89] sm:$0xff] }
  0x2f   : > { %401 = vrot.lane.b32.xlu1 %v260_v13, %s1713_s26 }
  0x30   : > { %633 = vrot.lane.b32.xlu0 %v268_v9, %s1718_s5 }
  0x33   : > { %669 = vrot.lane.b32.xlu1 %v314_v14, %s1719_s6 }
  0x34   : > { %543 = vrot.lane.b32.xlu0 %v295_v15, %s1715_s28 }
  0x37   : > { %579 = vrot.lane.b32.xlu1 %v304_v16, %s1716_s29 }
  0x38   : > { %437 = vrot.lane.b32.xlu0 %v269_v17, %s1710_s23 }
  0x3b   : > { %473 = vrot.lane.b32.xlu1 %v278_v18, %s1712_s25 }
  0x3c   : > { %705 = vrot.lane.b32.xlu0 %v323_v19, %s1720_s7 }
  0x3f   : > { %733 = vrot.lane.b32.xlu1 %v295_v15, %s1721_s8  ;;  %v291_v15 = vld [vmem:[%s1777_s22 + $0x123] sm:$0xff] }
  0x40   : > { %607 = vrot.lane.b32.xlu0 %v260_v13, %s1717_s30 }
  0x43   : > { %371 = vrot.lane.b32.xlu1 %v254_v20, %s1711_s24  ;;  %v298_v20 = vld [vmem:[%s1777_s22 + $0xc3] sm:$0xff] }
  0x44   : > { %367 = vrot.lane.b32.xlu0 %v252_v21, %s1711_s24  ;;  %v265_v21 = vld [vmem:[%s1777_s22 + $0x39] sm:$0xff] }
  0x47   : > { %635 = vrot.lane.b32.xlu1 %v269_v17, %s1718_s5 }
  0x48   : > { %509 = vrot.lane.b32.xlu0 %v287_v25, %s1714_s27  ;;  %v300_v25 = vld [vmem:[%s1777_s22 + $0xd3] sm:$0xff] }
  0x4b   : > { %403 = vrot.lane.b32.xlu1 %v261_v30, %s1713_s26 }
  0x4c   : > { %761 = vrot.lane.b32.xlu0 %v304_v16, %s1723_s12 }
  0x4f   : > { %545 = vrot.lane.b32.xlu1 %v296_v34, %s1715_s28 }
  0x50   : > { %407 = vrot.lane.b32.xlu0 %v1853_v35, %s1713_s26 }
  0x53   : > { %797 = vrot.lane.b32.xlu1 %v334_v39, %s1726_s21 }
  0x54   : > { %671 = vrot.lane.b32.xlu0 %v315_v40, %s1719_s6 }
  0x57   : > { %443 = vrot.lane.b32.xlu1 %v1873_v42, %s1710_s23 }
  0x58   : > { %439 = vrot.lane.b32.xlu0 %v270_v43, %s1710_s23 }
  0x5b   : > { %707 = vrot.lane.b32.xlu1 %v324_v44, %s1720_s7  ;;  %v328_v44 = vld [vmem:[%s1777_s22 + $0x83] sm:$0xff] }
  0x5c   : > { %581 = vrot.lane.b32.xlu0 %v305_v45, %s1716_s29 }
  0x5f   : > { %475 = vrot.lane.b32.xlu1 %v279_v46, %s1712_s25 }
  0x60   : > { %833 = vrot.lane.b32.xlu0 %v343_v47, %s1727_s9  ;;  %v283_v47 = vld [vmem:[%s1777_s22 + $0xda] sm:$0xff] }
  0x63   : > { %609 = vrot.lane.b32.xlu1 %v261_v30, %s1717_s30 }
  0x64   : > { %479 = vrot.lane.b32.xlu0 %v281_v48, %s1712_s25 }
  0x67   : > { %369 = vrot.lane.b32.xlu1 %v253_v49, %s1711_s24 }
  0x68   : > { %735 = vrot.lane.b32.xlu0 %v296_v34, %s1721_s8 }
  0x6b   : > { %511 = vrot.lane.b32.xlu1 %v288_v50, %s1714_s27  ;;  %v240_v50 = vld [vmem:[%s1777_s22] sm:$0xff] }
  0x6c   : > { %373 = vrot.lane.b32.xlu0 %v255_v51, %s1711_s24 }
  0x6f   : > { %637 = vrot.lane.b32.xlu1 %v270_v43, %s1718_s5  ;;  %v345_v43 = vld [vmem:[%s1777_s22 + $0x10d] sm:$0xff] }
  0x70   : > { %515 = vrot.lane.b32.xlu0 %v290_v52, %s1714_s27 }
  0x73   : > { %405 = vrot.lane.b32.xlu1 %v262_v53, %s1713_s26 }
  0x74   : > { %763 = vrot.lane.b32.xlu0 %v305_v45, %s1723_s12 }
  0x77   : > { %547 = vrot.lane.b32.xlu1 %v297_v54, %s1715_s28 }
  0x78   : > { %409 = vrot.lane.b32.xlu0 %v264_v55, %s1713_s26 }
  0x7b   : > { %673 = vrot.lane.b32.xlu1 %v316_v56, %s1719_s6 }
  0x7c   : > { %551 = vrot.lane.b32.xlu0 %v1909_v57, %s1715_s28 }
  0x7f   : > { %441 = vrot.lane.b32.xlu1 %v271_v58, %s1710_s23 }
  0x80   : > { %799 = vrot.lane.b32.xlu0 %v335_v59, %s1726_s21  ;;  %v292_v59 = vld [vmem:[%s1777_s22 + $0x12b] sm:$0xff] }
  0x83   : > { %583 = vrot.lane.b32.xlu1 %v306_v60, %s1716_s29 }
  0x84   : > { %445 = vrot.lane.b32.xlu0 %v273_v61, %s1710_s23 }
  0x85   : > { %v1926_v0 = vpop.permute.xlu1 %433 }
  0x86   : > { %v1928_v1 = vpop.permute.xlu0 %361 }
  0x87   : > { %709 = vrot.lane.b32.xlu1 %v325_v62, %s1720_s7 }
  0x88   : > { %587 = vrot.lane.b32.xlu0 %v1924_v63, %s1716_s29 }
  0x89   : > { %v1935_v4 = vpop.permute.xlu1 %469 }
  0x8a   : > { %v1937_v5 = vpop.permute.xlu0 %397 }
  0x8b   : > { %477 = vrot.lane.b32.xlu1 %v280_v2, %s1712_s25 }
  0x8c   : > { %835 = vrot.lane.b32.xlu0 %v344_v3, %s1727_s9 }
  0x8d   : > { %v1942_v7 = vpop.permute.xlu1 %505 }
  0x8e   : > { %v1944_v8 = vpop.permute.xlu0 %363 }
  0x8f   : > { %611 = vrot.lane.b32.xlu1 %v262_v53, %s1717_s30  ;;  %v861_v53 = vsel %vm860_vm1, %v240_v50, %v1928_v1 }
  0x90   : > { %481 = vrot.lane.b32.xlu0 %v282_v6, %s1712_s25  ;;  %v2075_v6 = vld [vmem:[%s1777_s22 + $0x41] sm:$0xff] }
  0x91   : > { %v1948_v9 = vpop.permute.xlu1 %541 }
  0x92   : > { %v1950_v10 = vpop.permute.xlu0 %399 }
  0x93   : > { %737 = vrot.lane.b32.xlu1 %v297_v54, %s1721_s8  ;;  %v871_v54 = vsel %vm870_vm2, %v861_v53, %v1937_v5 }
  0x94   : > { %615 = vrot.lane.b32.xlu0 %v264_v55, %s1717_s30  ;;  %v257_v55 = vld [vmem:[%s1777_s22 + $0x91] sm:$0xff] }
  0x95   : > { %v1956_v13 = vpop.permute.xlu1 %577 }
  0x96   : > { %v1958_v14 = vpop.permute.xlu0 %435 }
  0x97   : > { %513 = vrot.lane.b32.xlu1 %v289_v11, %s1714_s27 }
  0x98   : > { %375 = vrot.lane.b32.xlu0 %v256_v12, %s1711_s24 }
  0x99   : > { %v1963_v16 = vpop.permute.xlu1 %605 }
  0x9a   : > { %v1965_v17 = vpop.permute.xlu0 %471 }
  0x9b   : > { %639 = vrot.lane.b32.xlu1 %v271_v58, %s1718_s5  ;;  %v881_v58 = vsel %vm2476_vm3, %v871_v54, %v1926_v0 }
  0x9c   : > { %517 = vrot.lane.b32.xlu0 %v291_v15, %s1714_s27 }
  0x9d   : > { %v1969_v18 = vpop.permute.xlu1 %507 }
  0x9e   : > { %v1971_v19 = vpop.permute.xlu0 %365 }
  0x9f   : > { %765 = vrot.lane.b32.xlu1 %v306_v60, %s1723_s12  ;;  %v891_v60 = vsel %vm890_vm4, %v881_v58, %v1935_v4 }
  0xa0   : > { %643 = vrot.lane.b32.xlu0 %v273_v61, %s1718_s5  ;;  %v901_v0 = vsel %vm900_vm5, %v891_v60, %v1942_v7 }
  0xa1   : > { %v1977_v22 = vpop.permute.xlu1 %401  ;;  %v911_v1 = vsel %vm2477_vm6, %v901_v0, %v1948_v9 }
  0xa2   : > { %v1979_v23 = vpop.permute.xlu0 %633  ;;  %v921_v4 = vsel %vm920_vm7, %v911_v1, %v1956_v13 }
  0xa3   : > { %549 = vrot.lane.b32.xlu1 %v298_v20, %s1715_s28 }
  0xa4   : > { %411 = vrot.lane.b32.xlu0 %v265_v21, %s1713_s26 }
  0xa5   : > { %v1985_v26 = vpop.permute.xlu1 %669 }
  0xa6   : > { %v1987_v27 = vpop.permute.xlu0 %543 }
  0xa7   : > { %675 = vrot.lane.b32.xlu1 %v317_v24, %s1719_s6 }
  0xa8   : > { %553 = vrot.lane.b32.xlu0 %v300_v25, %s1715_s28 }
  0xa9   : > { %v1993_v30 = vpop.permute.xlu1 %579 }
  0xaa   : > { %v1995_v31 = vpop.permute.xlu0 %437 }
  0xab   : > { %801 = vrot.lane.b32.xlu1 %v336_v28, %s1726_s21  ;;  %v320_v28 = vld [vmem:[%s1777_s22 + $0x3a] sm:$0xff] }
  0xac   : > { %679 = vrot.lane.b32.xlu0 %v319_v29, %s1719_s6 }
  0xad   : > { %v2001_v34 = vpop.permute.xlu1 %473 }
  0xae   : > { %v2003_v36 = vpop.permute.xlu0 %705 }
  0xaf   : > { %585 = vrot.lane.b32.xlu1 %v307_v32, %s1716_s29 }
  0xb0   : > { %447 = vrot.lane.b32.xlu0 %v274_v33, %s1710_s23 }
  0xb1   : > { %v2011_v39 = vpop.permute.xlu1 %733 }
  0xb2   : > { %v2013_v40 = vpop.permute.xlu0 %607 }
  0xb3   : > { %711 = vrot.lane.b32.xlu1 %v326_v37, %s1720_s7  ;;  %v2109_v37 = vld [vmem:[%s1777_s22 + $0x92] sm:$0xff] }
  0xb4   : > { %589 = vrot.lane.b32.xlu0 %v2009_v38, %s1716_s29 }
  0xb5   : > { %v2020_v45 = vpop.permute.xlu1 %371 }
  0xb6   : > { %v2022_v46 = vpop.permute.xlu0 %367 }
  0xb7   : > { %837 = vrot.lane.b32.xlu1 %v345_v43, %s1727_s9 }
  0xb8   : > { %715 = vrot.lane.b32.xlu0 %v328_v44, %s1720_s7 }
  0xb9   : > { %v2027_v48 = vpop.permute.xlu1 %635 }
  0xba   : > { %v2029_v49 = vpop.permute.xlu0 %509 }
  0xbb   : > { %613 = vrot.lane.b32.xlu1 %v1853_v35, %s1717_s30 }
  0xbc   : > { %483 = vrot.lane.b32.xlu0 %v283_v47, %s1712_s25 }
  0xbd   : > { %v2035_v51 = vpop.permute.xlu1 %403 }
  0xbe   : > { %v762_v52 = vpop.permute.xlu0 %761 }
  0xbf   : > { %739 = vrot.lane.b32.xlu1 %v298_v20, %s1721_s8  ;;  %v2092_v20 = vld [vmem:[%s1777_s22 + $0xdb] sm:$0xff] }
  0xc0   : > { %617 = vrot.lane.b32.xlu0 %v265_v21, %s1717_s30 }
  0xc1   : > { %v2044_v35 = vpop.permute.xlu1 %545 }
  0xc2   : > { %v2046_v56 = vpop.permute.xlu0 %407 }
  0xc3   : > { %377 = vrot.lane.b32.xlu1 %v257_v55, %s1711_s24  ;;  %v327_v55 = vld [vmem:[%s1777_s22 + $0x7b] sm:$0xff] }
  0xc4   : > { %743 = vrot.lane.b32.xlu0 %v300_v25, %s1721_s8 }
  0xc5   : > { %v798_v61 = vpop.permute.xlu1 %797 }
  0xc6   : > { %v2055_v62 = vpop.permute.xlu0 %671 }
  0xc7   : > { %641 = vrot.lane.b32.xlu1 %v1873_v42, %s1718_s5  ;;  %v931_v42 = vsel %vm930_vm8, %v921_v4, %v1963_v16  ;;  %v318_v16 = vld [vmem:[%s1777_s22 + $0x2a] sm:$0xff] }
  0xc8   : > { %519 = vrot.lane.b32.xlu0 %v292_v59, %s1714_s27  ;;  %v941_v5 = vsel %vm940_vm9, %v931_v42, %v1979_v23 }
  0xc9   : > { %v2064_v2 = vpop.permute.xlu1 %443  ;;  %v951_v7 = vsel %vm950_vm10, %v941_v5, %v1985_v26  ;;  %v337_v26 = vld [vmem:[%s1777_s22 + $0xc4] sm:$0xff] }
  0xca   : > { %v440_v3 = vpop.permute.xlu0 %439  ;;  %v961_v12 = vsel %vm960_vm11, %v951_v7, %v2003_v36  ;;  %v243_v36 = vld [vmem:[%s1777_s22 + $0x18] sm:$0xff]  ;;  %v244_v5 = vld [vmem:[%s1777_s22 + $0x20] sm:$0xff] }
  0xcb   : > { %767 = vrot.lane.b32.xlu1 %v307_v32, %s1723_s12  ;;  %v971_v13 = vsel %vm2475_vm12, %v961_v12, %v2011_v39  ;;  %vm1025_vm12 = vcmask 523264   ;;  %v864_v47 = vsel %vm860_vm1, %v243_v36, %v2022_v46  ;;  %v2131_v46 = vld [vmem:[%s1777_s22 + $0x12c] sm:$0xff] }
  0xcc   : > { %645 = vrot.lane.b32.xlu0 %v274_v33, %s1718_s5  ;;  %v981_v15 = vsel %vm980_vm13, %v971_v13, %v762_v52  ;;  %v242_v33 = vld [vmem:[%s1777_s22 + $0x10] sm:$0xff]  ;;  %v245_v52 = vld [vmem:[%s1777_s22 + $0x28] sm:$0xff]  ;;  %v874_v53 = vsel %vm870_vm2, %v864_v47, %v2035_v51 }
  0xcd   : > { %v2079_v9 = vpop.permute.xlu1 %707  ;;  %v991_v21 = vsel %vm990_vm14, %v981_v15, %v798_v61  ;;  %v863_v44 = vsel %vm860_vm1, %v242_v33, %v1971_v19  ;;  %v884_v19 = vsel %vm2476_vm3, %v874_v53, %v440_v3  ;;  %v866_v60 = vsel %vm860_vm1, %v245_v52, %v2020_v45  ;;  %v329_v3 = vld [vmem:[%s1777_s22 + $0x8b] sm:$0xff] }
  0xce   : > { %v582_v11 = vpop.permute.xlu0 %581  ;;  %v873_v50 = vsel %vm870_vm2, %v863_v44, %v1977_v22  ;;  %v876_v1 = vsel %vm870_vm2, %v866_v60, %v2046_v56  ;;  %v241_v33 = vld [vmem:[%s1777_s22 + $0x8] sm:$0xff] }
  0xcf   : > { %413 = vrot.lane.b32.xlu1 %v2075_v6, %s1713_s26  ;;  %v883_v54 = vsel %vm2476_vm3, %v873_v50, %v1995_v31  ;;  %v862_v44 = vsel %vm860_vm1, %v241_v33, %v1944_v8 }
  0xd0   : > { %771 = vrot.lane.b32.xlu0 %v2009_v38, %s1723_s12  ;;  %v339_v38 = vld [vmem:[%s1777_s22 + $0xd4] sm:$0xff]  ;;  %v893_v22 = vsel %vm890_vm4, %v883_v54, %v2001_v34  ;;  %v886_v34 = vsel %vm2476_vm3, %v876_v1, %v2064_v2  ;;  %v284_v2 = vld [vmem:[%s1777_s22 + $0xe2] sm:$0xff] }
  0xd1   : > { %v476_v23 = vpop.permute.xlu1 %475  ;;  %v903_v31 = vsel %vm900_vm5, %v893_v22, %v2029_v49  ;;  %v346_v49 = vld [vmem:[%s1777_s22 + $0x115] sm:$0xff] }
  0xd2   : > { %v834_v24 = vpop.permute.xlu0 %833  ;;  %v894_v51 = vsel %vm890_vm4, %v884_v19, %v476_v23  ;;  %v913_v0 = vsel %vm2477_vm6, %v903_v31, %v2044_v35  ;;  %v330_v1 = vld [vmem:[%s1777_s22 + $0x93] sm:$0xff] }
  0xd3   : > { %v1001_v25 = vsel %vm1000_vm15, %v991_v21, %v834_v24  ;;  %677 = vrot.lane.b32.xlu1 %v318_v16, %s1719_s6  ;;  %v923_v45 = vsel %vm920_vm7, %v913_v0, %v582_v11  ;;  %v348_v11 = vld [vmem:[%s1777_s22 + $0x125] sm:$0xff]  ;;  %v246_v21 = vld [vmem:[%s1777_s22 + $0x30] sm:$0xff] }
  0xd4   : > { %555 = vrot.lane.b32.xlu0 %v2092_v20, %s1715_s28  ;;  %1578 = vmatmul.mubr.msk.f32.vlgmr.msra.gmra.mrb[0].mxu0 %vm1025_vm12, %v1001_v25 }
  0xd5   : > { %v610_v29 = vpop.permute.xlu1 %609  ;;  %1580 = vmatprep.mubr.msk.f32.mxu0 %vm1724_vm0, %v1725_v41 }
  0xd6   : > { %v480_v32 = vpop.permute.xlu0 %479  ;;  %v933_v35 = vsel %vm930_vm8, %v923_v45, %v610_v29 }
  0xd7   : > { %803 = vrot.lane.b32.xlu1 %v337_v26, %s1726_s21  ;;  %v896_v4 = vsel %vm890_vm4, %v886_v34, %v480_v32  ;;  %v293_v32 = vld [vmem:[%s1777_s22 + $0x133] sm:$0xff] }
  0xd8   : > { %681 = vrot.lane.b32.xlu0 %v320_v28, %s1719_s6 }
  0xd9   : > { %v370_v39 = vpop.permute.xlu1 %369 }
  0xda   : > { %v2112_v43 = vpop.permute.xlu0 %735  ;;  %v865_v13 = vsel %vm860_vm1, %v244_v5, %v370_v39 }
  0xdb   : > { %449 = vrot.lane.b32.xlu1 %v2109_v37, %s1710_s23 }
  0xdc   : > { %807 = vrot.lane.b32.xlu0 %v339_v38, %s1726_s21 }
  0xdd   : > { %v512_v58 = vpop.permute.xlu1 %511 }
  0xde   : > { %v374_v59 = vpop.permute.xlu0 %373  ;;  %v904_v61 = vsel %vm900_vm5, %v894_v51, %v512_v58 }
  0xdf   : > { %713 = vrot.lane.b32.xlu1 %v327_v55, %s1720_s7  ;;  %v867_v24 = vsel %vm860_vm1, %v246_v21, %v374_v59  ;;  %v340_v59 = vld [vmem:[%s1777_s22 + $0xdc] sm:$0xff] }
  0xe0   : > { %591 = vrot.lane.b32.xlu0 %v2131_v46, %s1716_s29 }
  0xe1   : > { %v638_v56 = vpop.permute.xlu1 %637 }
  0xe2   : > { %v516_v42 = vpop.permute.xlu0 %515  ;;  %v2157_v7 = vsel %vm940_vm9, %v933_v35, %v638_v56  ;;  %v312_v35 = vld [vmem:[%s1777_s22 + $0x49] sm:$0xff] }
  0xe3   : > { %v906_v12 = vsel %vm900_vm5, %v896_v4, %v516_v42  ;;  %839 = vrot.lane.b32.xlu1 %v346_v49, %s1727_s9  ;;  %v349_v4 = vld [vmem:[%s1777_s22 + $0x12d] sm:$0xff] }
  0xe4   : > { %717 = vrot.lane.b32.xlu0 %v329_v3, %s1720_s7 }
  0xe5   : > { %v406_v15 = vpop.permute.xlu1 %405 }
  0xe6   : > { %v764_v16 = vpop.permute.xlu0 %763  ;;  %v875_v23 = vsel %vm870_vm2, %v865_v13, %v406_v15  ;;  %v322_v15 = vld [vmem:[%s1777_s22 + $0x4a] sm:$0xff] }
  0xe7   : > { %485 = vrot.lane.b32.xlu1 %v284_v2, %s1712_s25 }
  0xe8   : > { %843 = vrot.lane.b32.xlu0 %v348_v11, %s1727_s9 }
  0xe9   : > { %v548_v25 = vpop.permute.xlu1 %547 }
  0xea   : > { %v410_v26 = vpop.permute.xlu0 %409  ;;  %v914_v28 = vsel %vm2477_vm6, %v904_v61, %v548_v25  ;;  %v331_v25 = vld [vmem:[%s1777_s22 + $0x9b] sm:$0xff] }
  0xeb   : > { %v877_v29 = vsel %vm870_vm2, %v867_v24, %v410_v26  ;;  %741 = vrot.lane.b32.xlu1 %v1909_v57, %s1721_s8  ;;  %v872_v57 = vsel %vm870_vm2, %v862_v44, %v1950_v10  ;;  %v302_v10 = vld [vmem:[%s1777_s22 + $0xe3] sm:$0xff] }
  0xec   : > { %619 = vrot.lane.b32.xlu0 %v2075_v6, %s1717_s30  ;;  %v882_v50 = vsel %vm2476_vm3, %v872_v57, %v1958_v14  ;;  %v341_v26 = vld [vmem:[%s1777_s22 + $0xe4] sm:$0xff] }
  0xed   : > { %v2178_v36 = vpop.permute.xlu1 %673  ;;  %v892_v53 = vsel %vm890_vm4, %v882_v50, %v1965_v17 }
  0xee   : > { %v552_v38 = vpop.permute.xlu0 %551  ;;  %v902_v8 = vsel %vm900_vm5, %v892_v53, %v1969_v18  ;;  %v342_v53 = vld [vmem:[%s1777_s22 + $0xec] sm:$0xff] }
  0xef   : > { %v916_v39 = vsel %vm2477_vm6, %v906_v12, %v552_v38  ;;  %521 = vrot.lane.b32.xlu1 %v293_v32, %s1714_s27  ;;  %v912_v14 = vsel %vm2477_vm6, %v902_v8, %v1987_v27  ;;  %v338_v27 = vld [vmem:[%s1777_s22 + $0xcc] sm:$0xff]  ;;  %v313_v12 = vld [vmem:[%s1777_s22 + $0x9a] sm:$0xff] }
  0xf0   : > { %745 = vrot.lane.b32.xlu0 %v2092_v20, %s1721_s8  ;;  %v922_v19 = vsel %vm920_vm7, %v912_v14, %v1993_v30  ;;  %v247_v32 = vld [vmem:[%s1777_s22 + $0x38] sm:$0xff]  ;;  %v332_v38 = vld [vmem:[%s1777_s22 + $0xeb] sm:$0xff] }
  0xf1   : > { %v442_v6 = vpop.permute.xlu1 %441 }
  0xf2   : > { %v800_v47 = vpop.permute.xlu0 %799  ;;  %v885_v52 = vsel %vm2476_vm3, %v875_v23, %v442_v6 }
  0xf3   : > { %769 = vrot.lane.b32.xlu1 %v1924_v63, %s1723_s12  ;;  %v932_v63 = vsel %vm930_vm8, %v922_v19, %v2013_v40 }
  0xf4   : > { %647 = vrot.lane.b32.xlu0 %v2109_v37, %s1718_s5  ;;  %v942_v18 = vsel %vm940_vm9, %v932_v63, %v2027_v48  ;;  %v321_v37 = vld [vmem:[%s1777_s22 + $0x42] sm:$0xff] }
  0xf5   : > { %v584_v20 = vpop.permute.xlu1 %583  ;;  %v952_v30 = vsel %vm950_vm10, %v942_v18, %v2055_v62  ;;  %v311_v62 = vld [vmem:[%s1777_s22 + $0x134] sm:$0xff] }
  0xf6   : > { %v446_v54 = vpop.permute.xlu0 %445  ;;  %v924_v17 = vsel %vm920_vm7, %v914_v28, %v584_v20  ;;  %v962_v40 = vsel %vm960_vm11, %v952_v30, %v2079_v9  ;;  %v351_v20 = vld [vmem:[%s1777_s22 + $0x13d] sm:$0xff] }
  0xf7   : > { %v887_v55 = vsel %vm2476_vm3, %v877_v29, %v446_v54  ;;  %557 = vrot.lane.b32.xlu1 %v302_v10, %s1715_s28  ;;  %vm2478_vm3 = vcmask 392192   ;;  %s1531_s28 = sshll.u32 %s2494_s15, 1 }
  0xf8   : > { %773 = vrot.lane.b32.xlu0 %v2131_v46, %s1723_s12  ;;  %v972_v46 = vsel %vm2478_vm3, %v962_v40, %v2112_v43  ;;  %v347_v43 = vld [vmem:[%s1777_s22 + $0x11d] sm:$0xff]  ;;  %vm2479_vm3 = vcmask 97280  }
  0xf9   : > { %v2217_v22 = vpop.permute.xlu1 %709  ;;  %v982_v48 = vsel %vm980_vm13, %v972_v46, %v764_v16 }
  0xfa   : > { %v588_v51 = vpop.permute.xlu0 %587  ;;  %v992_v60 = vsel %vm990_vm14, %v982_v48, %v800_v47 }
  0xfb   : > { %v926_v58 = vsel %vm920_vm7, %v916_v39, %v588_v51  ;;  %805 = vrot.lane.b32.xlu1 %v338_v27, %s1726_s21  ;;  %v350_v39 = vld [vmem:[%s1777_s22 + $0x135] sm:$0xff]  ;;  %v953_v27 = vsel %vm950_vm10, %v2157_v7, %v2178_v36 }
  0xfc   : > { %683 = vrot.lane.b32.xlu0 %v321_v37, %s1719_s6  ;;  %v963_v51 = vsel %vm960_vm11, %v953_v27, %v2217_v22 }
  0xfd   : > { %v478_v31 = vpop.permute.xlu1 %477 }
  0xfe   : > { %v836_v9 = vpop.permute.xlu0 %835  ;;  %v895_v61 = vsel %vm890_vm4, %v885_v52, %v478_v31  ;;  %v333_v52 = vld [vmem:[%s1777_s22 + $0x13c] sm:$0xff] }
  0xff   : > { %v1002_v0 = vsel %vm1000_vm15, %v992_v60, %v836_v9  ;;  %593 = vrot.lane.b32.xlu1 %v311_v62, %s1716_s29 }
 0x100   : > { %809 = vrot.lane.b32.xlu0 %v340_v59, %s1726_s21  ;;  %1581 = vmatmul.mubr.msk.f32.gmra.mrb[2].mxu0 %vm1025_vm12, %v1002_v0 }
 0x101   : > { %v612_v34 = vpop.permute.xlu1 %611  ;;  %1583 = vmatprep.mubr.msk.f32.mxu0 %vm1724_vm0, %v1725_v41 }
 0x102   : > { %v482_v45 = vpop.permute.xlu0 %481  ;;  %v934_v49 = vsel %vm930_vm8, %v924_v17, %v612_v34 }
 0x103   : > { %v897_v3 = vsel %vm890_vm4, %v887_v55, %v482_v45  ;;  %841 = vrot.lane.b32.xlu1 %v347_v43, %s1727_s9 }
 0x104   : > { %719 = vrot.lane.b32.xlu0 %v330_v1, %s1720_s7 }
 0x105   : > { %v738_v56 = vpop.permute.xlu1 %737 }
 0x106   : > { %v616_v42 = vpop.permute.xlu0 %615 }
 0x107   : > { %v936_v5 = vsel %vm930_vm8, %v926_v58, %v616_v42  ;;  %621 = vrot.lane.b32.xlu1 %v312_v35, %s1717_s30 }
 0x108   : > { %845 = vrot.lane.b32.xlu0 %v349_v4, %s1727_s9  ;;  %v248_v4 = vld [vmem:[%s1777_s22 + $0x40] sm:$0xff]  ;;  %s1625_s22 = smul.u32 72, %s2494_s15 }
 0x109   : > { %v514_v2 = vpop.permute.xlu1 %513 }
 0x10a   : > { %v376_v11 = vpop.permute.xlu0 %375  ;;  %v905_v13 = vsel %vm900_vm5, %v895_v61, %v514_v2  ;;  %s2397_s27 = scalar_lea.vmem %s2473_s3, %s1625_s22 }
 0x10b   : > { %649 = vrot.lane.b32.xlu1 %v313_v12, %s1718_s5  ;;  %v868_v44 = vsel %vm860_vm1, %v247_v32, %v376_v11  ;;  %s239_s5 = scalar_lea.vmem %s2474_s4, %s1531_s28 }
 0x10c   : > { %747 = vrot.lane.b32.xlu0 %v302_v10, %s1721_s8 }
 0x10d   : > { %v640_v16 = vpop.permute.xlu1 %639 }
 0x10e   : > { %v518_v21 = vpop.permute.xlu0 %517  ;;  %v2254_v23 = vsel %vm940_vm9, %v934_v49, %v640_v16 }
 0x10f   : > { %v907_v24 = vsel %vm900_vm5, %v897_v3, %v518_v21  ;;  %685 = vrot.lane.b32.xlu1 %v322_v15, %s1719_s6 }
 0x110   : > { %775 = vrot.lane.b32.xlu0 %v311_v62, %s1723_s12 }
 0x111   : > { %v766_v28 = vpop.permute.xlu1 %765 }
 0x112   : > { %v644_v29 = vpop.permute.xlu0 %643 }
 0x113   : > { %v2263_v33 = vsel %vm940_vm9, %v936_v5, %v644_v29  ;;  %721 = vrot.lane.b32.xlu1 %v331_v25, %s1720_s7 }
 0x114   : > { %811 = vrot.lane.b32.xlu0 %v341_v26, %s1726_s21 }
 0x115   : > { %v550_v57 = vpop.permute.xlu1 %549 }
 0x116   : > { %v412_v6 = vpop.permute.xlu0 %411  ;;  %v915_v47 = vsel %vm2477_vm6, %v905_v13, %v550_v57 }
 0x117   : > { %v878_v50 = vsel %vm870_vm2, %v868_v44, %v412_v6  ;;  %749 = vrot.lane.b32.xlu1 %v332_v38, %s1721_s8 }
 0x118   : > { %847 = vrot.lane.b32.xlu0 %v350_v39, %s1727_s9 }
 0x119   : > { %v676_v8 = vpop.permute.xlu1 %675 }
 0x11a   : > { %v554_v10 = vpop.permute.xlu0 %553 }
 0x11b   : > { %v917_v14 = vsel %vm2477_vm6, %v907_v24, %v554_v10  ;;  %813 = vrot.lane.b32.xlu1 %v342_v53, %s1726_s21  ;;  %vm2480_vm6 = vcmask 392192   ;;  %v954_v24 = vsel %vm950_vm10, %v2254_v23, %v676_v8 }
 0x11c   : > { %777 = vrot.lane.b32.xlu0 %v333_v52, %s1723_s12  ;;  %v973_v58 = vsel %vm2480_vm6, %v963_v51, %v738_v56 }
 0x11d   : > { %v802_v54 = vpop.permute.xlu1 %801  ;;  %v983_v46 = vsel %vm980_vm13, %v973_v58, %v766_v28 }
 0x11e   : > { %v680_v19 = vpop.permute.xlu0 %679  ;;  %v993_v48 = vsel %vm990_vm14, %v983_v46, %v802_v54 }
 0x11f   : > { %v956_v38 = vsel %vm950_vm10, %v2263_v33, %v680_v19 }
 0x120   : > { %849 = vrot.lane.b32.xlu0 %v351_v20, %s1727_s9 }
 0x121   : > { %v586_v17 = vpop.permute.xlu1 %585 }
 0x122   : > { %v448_v55 = vpop.permute.xlu0 %447  ;;  %v925_v63 = vsel %vm920_vm7, %v915_v47, %v586_v17 }
 0x123   : > { %v888_v18 = vsel %vm2479_vm3, %v878_v50, %v448_v55 }
 0x125   : > { %v712_v37 = vpop.permute.xlu1 %711 }
 0x126   : > { %v590_v30 = vpop.permute.xlu0 %589  ;;  %v964_v28 = vsel %vm960_vm11, %v954_v24, %v712_v37 }
 0x127   : > { %v927_v40 = vsel %vm920_vm7, %v917_v14, %v590_v30 }
 0x129   : > { %v838_v62 = vpop.permute.xlu1 %837 }
 0x12a   : > { %v716_v59 = vpop.permute.xlu0 %715  ;;  %v1003_v60 = vsel %vm1000_vm15, %v993_v48, %v838_v62 }
 0x12b   : > { %1584 = vmatmul.mubr.msk.f32.gmra.mrb[4].mxu0 %vm1025_vm12, %v1003_v60  ;;  %v966_v6 = vsel %vm960_vm11, %v956_v38, %v716_v59 }
 0x12c   : > { %1586 = vmatprep.mubr.msk.f32.mxu0 %vm1724_vm0, %v1725_v41 }
 0x12d   : > { %v614_v7 = vpop.permute.xlu1 %613 }
 0x12e   : > { %v484_v36 = vpop.permute.xlu0 %483  ;;  %v935_v22 = vsel %vm930_vm8, %v925_v63, %v614_v7 }
 0x12f   : > { %v898_v31 = vsel %vm890_vm4, %v888_v18, %v484_v36 }
 0x131   : > { %v740_v9 = vpop.permute.xlu1 %739 }
 0x132   : > { %v618_v61 = vpop.permute.xlu0 %617 }
 0x133   : > { %v937_v0 = vsel %vm930_vm8, %v927_v40, %v618_v61 }
 0x135   : > { %v378_v43 = vpop.permute.xlu1 %377 }
 0x136   : > { %v744_v1 = vpop.permute.xlu0 %743  ;;  %v869_v56 = vsel %vm860_vm1, %v248_v4, %v378_v43  ;;  %vm2481_vm1 = vmmov %vm2480_vm6 }
 0x137   : > { %v974_v29 = vsel %vm2481_vm1, %v964_v28, %v740_v9  ;;  %vm2483_vm6 = vmmov %vm2481_vm1 }
 0x138   : > { %vm2484_vm3 = vmmov %vm2481_vm1 }
 0x139   : > { %v642_v34 = vpop.permute.xlu1 %641 }
 0x13a   : > { %v520_v45 = vpop.permute.xlu0 %519  ;;  %v945_v37 = vsel %vm940_vm9, %v935_v22, %v642_v34 }
 0x13b   : > { %v2300_v49 = vsel %vm900_vm5, %v898_v31, %v520_v45 }
 0x13d   : > { %v768_v3 = vpop.permute.xlu1 %767 }
 0x13e   : > { %v646_v35 = vpop.permute.xlu0 %645  ;;  %v984_v32 = vsel %vm980_vm13, %v974_v29, %v768_v3 }
 0x13f   : > { %v947_v48 = vsel %vm940_vm9, %v937_v0, %v646_v35 }
 0x141   : > { %v414_v42 = vpop.permute.xlu1 %413 }
 0x142   : > { %v772_v5 = vpop.permute.xlu0 %771  ;;  %v2305_v12 = vsel %vm870_vm2, %v869_v56, %v414_v42  ;;  %vm2482_vm2 = vmmov %vm2481_vm1  ;;  %vm2485_vm1 = vcmask 195584  }
 0x143   : > { %v976_v23 = vsel %vm2482_vm2, %v966_v6, %v744_v1  ;;  %vm2486_vm2 = vcmask 97280  }
 0x144   : > { %v986_v50 = vsel %vm980_vm13, %v976_v23, %v772_v5  ;;  %v1163_v5 = vlaneseq }
 0x145   : > { %v678_v2 = vpop.permute.xlu1 %677 }
 0x146   : > { %v2307_v11 = vpop.permute.xlu0 %555  ;;  %v955_v30 = vsel %vm950_vm10, %v945_v37, %v678_v2 }
 0x147   : > { %v918_v35 = vsel %vm2485_vm1, %v2300_v49, %v2307_v11 }
 0x149   : > { %v804_v13 = vpop.permute.xlu1 %803 }
 0x14a   : > { %v682_v15 = vpop.permute.xlu0 %681  ;;  %v994_v39 = vsel %vm990_vm14, %v984_v32, %v804_v13 }
 0x14b   : > { %v957_v59 = vsel %vm950_vm10, %v947_v48, %v682_v15 }
 0x14d   : > { %v2309_v16 = vpop.permute.xlu1 %449 }
 0x14e   : > { %v808_v21 = vpop.permute.xlu0 %807  ;;  %v889_v13 = vsel %vm2486_vm2, %v2305_v12, %v2309_v16 }
 0x14f   : > { %v996_v52 = vsel %vm990_vm14, %v986_v50, %v808_v21 }
 0x151   : > { %v714_v25 = vpop.permute.xlu1 %713 }
 0x152   : > { %v592_v26 = vpop.permute.xlu0 %591  ;;  %v965_v58 = vsel %vm960_vm11, %v955_v30, %v714_v25 }
 0x153   : > { %v928_v42 = vsel %vm920_vm7, %v918_v35, %v592_v26  ;;  %v2362_v26 = vshrl.u32 %v1163_v5, 7 }
 0x155   : > { %v840_v44 = vpop.permute.xlu1 %839  ;;  %v2373_v23 = vmul.u32.u64.low 3817748708, %v2362_v26  ;;  %v2374_v50 = vmul.u32.u64.high 3817748708, %v2362_v26, %v2373_v23 }
 0x156   : > { %v718_v57 = vpop.permute.xlu0 %717  ;;  %v1004_v47 = vsel %vm1000_vm15, %v994_v39, %v840_v44 }
 0x157   : > { %1587 = vmatmul.mubr.msk.f32.gmra.mrb[6].mxu0 %vm1025_vm12, %v1004_v47  ;;  %v967_v22 = vsel %vm960_vm11, %v957_v59, %v718_v57 }
 0x158   : > { %1589 = vmatprep.mubr.msk.f32.mxu0 %vm1724_vm0, %v1725_v41 }
 0x159   : > { %v486_v33 = vpop.permute.xlu1 %485 }
 0x15a   : > { %v844_v53 = vpop.permute.xlu0 %843  ;;  %v899_v21 = vsel %vm890_vm4, %v889_v13, %v486_v33  ;;  %vm2488_vm4 = vmmov %vm2484_vm3 }
 0x15b   : > { %v1006_v8 = vsel %vm1000_vm15, %v996_v52, %v844_v53 }
 0x15c   : > { %1593 = vmatmul.mubr.msk.f32.vlgmr.msra.gmra.mrb[0].mxu1 %vm1025_vm12, %v1006_v8 }
 0x15d   : > { %1595 = vmatprep.mubr.msk.f32.mxu1 %vm1724_vm0, %v1725_v41  ;;  %v742_v10 = vpop.permute.xlu1 %741 }
 0x15e   : > { %v620_v14 = vpop.permute.xlu0 %619  ;;  %v975_v46 = vsel %vm2483_vm6, %v965_v58, %v742_v10  ;;  %vm2487_vm6 = vmmov %vm2485_vm1  ;;  %v1165_v58 = vadd.s32 8, %v2362_v26 }
 0x15f   : > { %v938_v2 = vsel %vm930_vm8, %v928_v42, %v620_v14 }
 0x161   : > { %v522_v20 = vpop.permute.xlu1 %521 }
 0x162   : > { %v746_v54 = vpop.permute.xlu0 %745  ;;  %v909_v49 = vsel %vm900_vm5, %v899_v21, %v522_v20 }
 0x163   : > { %v977_v9 = vsel %vm2484_vm3, %v967_v22, %v746_v54 }
 0x165   : > { %v770_v19 = vpop.permute.xlu1 %769 }
 0x166   : > { %v648_v17 = vpop.permute.xlu0 %647  ;;  %v985_v62 = vsel %vm980_vm13, %v975_v46, %v770_v19  ;;  %v2402_v46 = vmul.u32.u64.low 3817748708, %v1165_v58  ;;  %v2403_v48 = vmul.u32.u64.high 3817748708, %v1165_v58, %v2402_v46 }
 0x167   : > { %v948_v15 = vsel %vm940_vm9, %v938_v2, %v648_v17  ;;  %v1179_v17 = vshrl.u32 %v2374_v50, 3 }
 0x169   : > { %v558_v55 = vpop.permute.xlu1 %557 }
 0x16a   : > { %v774_v63 = vpop.permute.xlu0 %773  ;;  %v919_v29 = vsel %vm2487_vm6, %v909_v49, %v558_v55  ;;  %v1180_v55 = vmul.u32 9, %v1179_v17 }
 0x16b   : > { %v987_v61 = vsel %vm980_vm13, %v977_v9, %v774_v63 }
 0x16c   : > { %v1181_v63 = vsub.s32 %v2362_v26, %v1180_v55  ;;  %v1170_v55 = vadd.s32 48, %v2362_v26 }
 0x16d   : > { %v806_v18 = vpop.permute.xlu1 %805 }
 0x16e   : > { %v684_v27 = vpop.permute.xlu0 %683  ;;  %v995_v60 = vsel %vm990_vm14, %v985_v62, %v806_v18  ;;  %vm1281_vm5 = vcmp.lt.s32.totalorder %v1181_v63, 0  ;;  %v1190_v62 = vshrl.u32 %v2403_v48, 3 }
 0x16f   : > { %v958_v24 = vsel %vm950_vm10, %v948_v15, %v684_v27  ;;  %v2392_v27 = vld [vmem:[%s2472_s2] ss:$0 sm:$0xff] }
 0x170   : > { %v1191_v59 = vmul.u32 9, %v1190_v62 }
 0x171   : > { %v594_v51 = vpop.permute.xlu1 %593 }
 0x172   : > { %v810_v40 = vpop.permute.xlu0 %809  ;;  %v929_v12 = vsel %vm920_vm7, %v919_v29, %v594_v51 }
 0x173   : > { %v997_v0 = vsel %vm990_vm14, %v987_v61, %v810_v40 }
 0x175   : > { %v842_v7 = vpop.permute.xlu1 %841 }
 0x176   : > { %v720_v36 = vpop.permute.xlu0 %719  ;;  %v1005_v31 = vsel %vm1000_vm15, %v995_v60, %v842_v7  ;;  %v1192_v60 = vsub.s32 %v1165_v58, %v1191_v59  ;;  %v2433_v58 = vmul.u32.u64.low 3817748708, %v1170_v55  ;;  %v2434_v46 = vmul.u32.u64.high 3817748708, %v1170_v55, %v2433_v58 }
 0x177   : > { %1590 = vmatmul.mubr.msk.f32.gmra.mrb[8].mxu0 %vm1025_vm12, %v1005_v31  ;;  %v968_v11 = vsel %vm960_vm11, %v958_v24, %v720_v36 }
 0x178   : > { %v1300_v7 = vadd.s32 9, %v1192_v60  ;;  %v1245_v59 = vshrl.u32 %v2434_v46, 3 }
 0x179   : > { %v622_v43 = vpop.permute.xlu1 %621 }
 0x17a   : > { %v846_v1 = vpop.permute.xlu0 %845  ;;  %v939_v38 = vsel %vm930_vm8, %v929_v12, %v622_v43  ;;  %v1169_v12 = vadd.s32 40, %v2362_v26 }
 0x17b   : > { %v1007_v34 = vsel %vm1000_vm15, %v997_v0, %v846_v1 }
 0x17c   : > { %1596 = vmatmul.mubr.msk.f32.gmra.mrb[2].mxu1 %vm1025_vm12, %v1007_v34 }
 0x17d   : > { %1598 = vmatprep.mubr.msk.f32.mxu1 %vm1724_vm0, %v1725_v41  ;;  %v650_v45 = vpop.permute.xlu1 %649 }
 0x17e   : > { %v748_v3 = vpop.permute.xlu0 %747  ;;  %v949_v6 = vsel %vm940_vm9, %v939_v38, %v650_v45  ;;  %vm1273_vm9 = vcmp.ne.s32.totalorder %v1192_v60, 0  ;;  %v1166_v45 = vadd.s32 16, %v2362_v26 }
 0x17f   : > { %v978_v32 = vsel %vm2484_vm3, %v968_v11, %v748_v3  ;;  %v1167_v11 = vadd.s32 24, %v2362_v26 }
 0x180   : > { %v2409_v3 = vmul.u32.u64.low 3817748708, %v1166_v45  ;;  %v2410_v35 = vmul.u32.u64.high 3817748708, %v1166_v45, %v2409_v3 }
 0x181   : > { %v686_v4 = vpop.permute.xlu1 %685 }
 0x182   : > { %v776_v56 = vpop.permute.xlu0 %775  ;;  %v959_v52 = vsel %vm950_vm10, %v949_v6, %v686_v4  ;;  %vm1282_vm10 = vcmp.lt.s32.totalorder %v1192_v60, 0  ;;  %v1201_v4 = vshrl.u32 %v2410_v35, 3 }
 0x183   : > { %v988_v16 = vsel %vm980_vm13, %v978_v32, %v776_v56  ;;  %v2416_v29 = vmul.u32.u64.low 3817748708, %v1167_v11  ;;  %v2417_v32 = vmul.u32.u64.high 3817748708, %v1167_v11, %v2416_v29 }
 0x184   : > { %v1202_v56 = vmul.u32 9, %v1201_v4 }
 0x185   : > { %v722_v25 = vpop.permute.xlu1 %721 }
 0x186   : > { %v812_v28 = vpop.permute.xlu0 %811  ;;  %v969_v33 = vsel %vm960_vm11, %v959_v52, %v722_v25  ;;  %vm1291_vm11 = vmand %vm1282_vm10, %vm1273_vm9  ;;  %v1203_v42 = vsub.s32 %v1166_v45, %v1202_v56 }
 0x187   : > { %v998_v39 = vsel %vm990_vm14, %v988_v16, %v812_v28  ;;  %v1309_v36 = vsel %vm1291_vm11, %v1300_v7, %v1192_v60  ;;  %v2420_v16 = vmul.u32.u64.low 3817748708, %v1169_v12  ;;  %v2421_v38 = vmul.u32.u64.high 3817748708, %v1169_v12, %v2420_v16 }
 0x188   : > { %v1301_v5 = vadd.s32 9, %v1203_v42  ;;  %v1246_v7 = vmul.u32 9, %v1245_v59 }
 0x189   : > { %v750_v44 = vpop.permute.xlu1 %749 }
 0x18a   : > { %v848_v57 = vpop.permute.xlu0 %847  ;;  %v979_v53 = vsel %vm2488_vm4, %v969_v33, %v750_v44 }
 0x18b   : > { %v1008_v47 = vsel %vm1000_vm15, %v998_v39, %v848_v57  ;;  %v1212_v39 = vshrl.u32 %v2417_v32, 3  ;;  %v1234_v57 = vshrl.u32 %v2421_v38, 3 }
 0x18c   : > { %1599 = vmatmul.mubr.msk.f32.gmra.mrb[4].mxu1 %vm1025_vm12, %v1008_v47 }
 0x18d   : > { %1601 = vmatprep.mubr.msk.f32.mxu1 %vm1724_vm0, %v1725_v41  ;;  %v814_v14 = vpop.permute.xlu1 %813  ;;  %vm1272_vm0 = vcmp.ne.s32.totalorder %v1181_v63, 0  ;;  %v1299_v41 = vadd.s32 9, %v1181_v63  ;;  %v1213_v44 = vmul.u32 9, %v1212_v39  ;;  %v1235_v47 = vmul.u32 9, %v1234_v57 }
 0x18e   : > { %v778_v8 = vpop.permute.xlu0 %777  ;;  %vm1290_vm7 = vmand %vm1281_vm5, %vm1272_vm0 }
 0x18f   : > { %v989_v10 = vsel %vm980_vm13, %v979_v53, %v778_v8  ;;  %v1308_v18 = vsel %vm1290_vm7, %v1299_v41, %v1181_v63  ;;  %vm1274_vm13 = vcmp.ne.s32.totalorder %v1203_v42, 0  ;;  %v1214_v6 = vsub.s32 %v1167_v11, %v1213_v44 }
 0x190   : > { %v999_v20 = vsel %vm990_vm14, %v989_v10, %v814_v14  ;;  %vm1317_vm8 = vcmp.lt.s32.totalorder %v1308_v18, 8  ;;  %vm1283_vm14 = vcmp.lt.s32.totalorder %v1203_v42, 0  ;;  %v1236_v23 = vsub.s32 %v1169_v12, %v1235_v47 }
 0x191   : > { %vm1275_vm2 = vcmp.ne.s32.totalorder %v1214_v6, 0  ;;  %vm1284_vm6 = vcmp.lt.s32.totalorder %v1214_v6, 0  ;;  %v1302_v50 = vadd.s32 9, %v1214_v6  ;;  %v1168_v53 = vadd.s32 32, %v2362_v26 }
 0x192   : > { %v850_v54 = vpop.permute.xlu0 %849  ;;  %vm1293_vm3 = vmand %vm1284_vm6, %vm1275_vm2  ;;  %vm1277_vm4 = vcmp.ne.s32.totalorder %v1236_v23, 0  ;;  %vm1286_vm0 = vcmp.lt.s32.totalorder %v1236_v23, 0  ;;  %v1304_v33 = vadd.s32 9, %v1236_v23 }
 0x193   : > { %v1009_v19 = vsel %vm1000_vm15, %v999_v20, %v850_v54  ;;  %vm1292_vm15 = vmand %vm1283_vm14, %vm1274_vm13  ;;  %v1311_v52 = vsel %vm1293_vm3, %v1302_v50, %v1214_v6 }
 0x194   : > { %1602 = vmatmul.mubr.msk.f32.gmra.mrb[6].mxu1 %vm1025_vm12, %v1009_v19  ;;  %vm1318_vm12 = vcmp.lt.s32.totalorder %v1309_v36, 8  ;;  %v1310_v2 = vsel %vm1292_vm15, %v1301_v5, %v1203_v42  ;;  %vm1295_vm5 = vmand %vm1286_vm0, %vm1277_vm4  ;;  %vm1320_vm7 = vcmp.lt.s32.totalorder %v1311_v52, 8  ;;  %v1171_v36 = vadd.s32 56, %v2362_v26 }
 0x195   : > { %vm1319_vm1 = vcmp.lt.s32.totalorder %v1310_v2, 8  ;;  %v1313_v20 = vsel %vm1295_vm5, %v1304_v33, %v1236_v23  ;;  %v2427_v54 = vmul.u32.u64.low 3817748708, %v1168_v53  ;;  %v2428_v19 = vmul.u32.u64.high 3817748708, %v1168_v53, %v2427_v54 }
 0x197   : > { %v1223_v48 = vshrl.u32 %v2428_v19, 3 }
 0x199   : > { %v1224_v62 = vmul.u32 9, %v1223_v48 }
 0x19b   : > { %v1225_v60 = vsub.s32 %v1168_v53, %v1224_v62 }
 0x19d   : > { %vm1276_vm9 = vcmp.ne.s32.totalorder %v1225_v60, 0  ;;  %vm1285_vm10 = vcmp.lt.s32.totalorder %v1225_v60, 0 }
 0x19e   : > { %vm1294_vm11 = vmand %vm1285_vm10, %vm1276_vm9  ;;  %vm1399_vm9 = vcmask 1040384  }
 0x1a7   : > { %v1119_v37 = vpop.f32.mrb[0].mxu0 }
 0x1a8   : > { %v1120_v30 = vadd.f32 %v2392_v27, %v1119_v37  ;;  %v1579_v51 = vpop.f32.mrb[1].mxu0 }
 0x1aa   : > { %v1344_v40 = vsel %vm1317_vm8, %v1120_v30, 0.0  ;;  %vm1322_vm8 = vcmp.lt.s32.totalorder %v1313_v20, 8 }
 0x1ab   : > { %1353 = vst [vmem:[%s2397_s27] sm:$0xff] %v1344_v40  ;;  %v1376_v0 = vmul.f32 %v1344_v40, %v1344_v40 }
 0x1d3   : > { %v1124_v22 = vpop.f32.mrb[2].mxu0 }
 0x1d4   : > { %v1125_v31 = vadd.f32 %v2392_v27, %v1124_v22  ;;  %v1582_v9 = vpop.f32.mrb[3].mxu0  ;;  %v1247_v22 = vsub.s32 %v1170_v55, %v1246_v7 }
 0x1d6   : > { %v1345_v61 = vsel %vm1318_vm12, %v1125_v31, 0.0  ;;  %v2440_v31 = vmul.u32.u64.low 3817748708, %v1171_v36  ;;  %v2441_v9 = vmul.u32.u64.high 3817748708, %v1171_v36, %v2440_v31  ;;  %vm1278_vm12 = vcmp.ne.s32.totalorder %v1247_v22, 0 }
 0x1d7   : > { %1354 = vst [vmem:[%s2397_s27 + $0x8] sm:$0xff] %v1345_v61  ;;  %v1362_v43 = vadd.f32 %v1345_v61, %v1344_v40  ;;  %v1377_v1 = vmul.f32 %v1345_v61, %v1345_v61  ;;  %v1303_v61 = vadd.s32 9, %v1225_v60  ;;  %vm1287_vm13 = vcmp.lt.s32.totalorder %v1247_v22, 0 }
 0x1d8   : > { %vm1296_vm14 = vmand %vm1287_vm13, %vm1278_vm12 }
 0x1d9   : > { %v1385_v34 = vadd.f32 %v1377_v1, %v1376_v0  ;;  %v1172_v0 = vadd.s32 64, %v2362_v26  ;;  %v1305_v1 = vadd.s32 9, %v1247_v22 }
 0x1db   : > { %v2445_v45 = vmul.u32.u64.low 3817748708, %v1172_v0  ;;  %v2446_v3 = vmul.u32.u64.high 3817748708, %v1172_v0, %v2445_v45  ;;  %v1314_v42 = vsel %vm1296_vm14, %v1305_v1, %v1247_v22 }
 0x1dd   : > { %v1267_v32 = vshrl.u32 %v2446_v3, 3 }
 0x1df   : > { %v1268_v44 = vmul.u32 9, %v1267_v32 }
 0x1e1   : > { %v1269_v6 = vsub.s32 %v1172_v0, %v1268_v44 }
 0x1e3   : > { %vm1280_vm4 = vcmp.ne.s32.totalorder %v1269_v6, 0  ;;  %vm1289_vm0 = vcmp.lt.s32.totalorder %v1269_v6, 0  ;;  %v1307_v33 = vadd.s32 9, %v1269_v6 }
 0x1fe   : > { %v1129_v13 = vpop.f32.mrb[4].mxu0 }
 0x1ff   : > { %v1130_v15 = vadd.f32 %v2392_v27, %v1129_v13  ;;  %v1585_v21 = vpop.f32.mrb[5].mxu0 }
 0x201   : > { %v1346_v24 = vsel %vm1319_vm1, %v1130_v15, 0.0  ;;  %vm1323_vm1 = vcmp.lt.s32.totalorder %v1314_v42, 8 }
 0x202   : > { %1355 = vst [vmem:[%s2397_s27 + $0x10] sm:$0xff] %v1346_v24  ;;  %v1363_v25 = vadd.f32 %v1362_v43, %v1346_v24  ;;  %v1378_v28 = vmul.f32 %v1346_v24, %v1346_v24  ;;  %v1312_v43 = vsel %vm1294_vm11, %v1303_v61, %v1225_v60 }
 0x203   : > { %vm1321_vm15 = vcmp.lt.s32.totalorder %v1312_v43, 8 }
 0x204   : > { %v1386_v49 = vadd.f32 %v1385_v34, %v1378_v28  ;;  %v1256_v34 = vshrl.u32 %v2441_v9, 3 }
 0x206   : > { %v1257_v2 = vmul.u32 9, %v1256_v34 }
 0x208   : > { %v1258_v29 = vsub.s32 %v1171_v36, %v1257_v2 }
 0x20a   : > { %vm1279_vm2 = vcmp.ne.s32.totalorder %v1258_v29, 0  ;;  %vm1288_vm6 = vcmp.lt.s32.totalorder %v1258_v29, 0  ;;  %v1306_v57 = vadd.s32 9, %v1258_v29 }
 0x20b   : > { %vm1297_vm3 = vmand %vm1288_vm6, %vm1279_vm2 }
 0x20c   : > { %v1315_v47 = vsel %vm1297_vm3, %v1306_v57, %v1258_v29 }
 0x20d   : > { %vm1324_vm5 = vcmp.lt.s32.totalorder %v1315_v47, 8 }
 0x22a   : > { %v1134_v8 = vpop.f32.mrb[6].mxu0 }
 0x22b   : > { %v1135_v10 = vadd.f32 %v2392_v27, %v1134_v8  ;;  %v1588_v14 = vpop.f32.mrb[7].mxu0 }
 0x22d   : > { %v1347_v17 = vsel %vm1320_vm7, %v1135_v10, 0.0  ;;  %vm1298_vm7 = vmand %vm1289_vm0, %vm1280_vm4 }
 0x22e   : > { %1356 = vst [vmem:[%s2397_s27 + $0x18] sm:$0xff] %v1347_v17  ;;  %v1364_v63 = vadd.f32 %v1363_v25, %v1347_v17  ;;  %v1379_v41 = vmul.f32 %v1347_v17, %v1347_v17  ;;  %v1316_v14 = vsel %vm1298_vm7, %v1307_v33, %v1269_v6 }
 0x22f   : > { %v1144_v18 = vpop.f32.mrb[0].mxu1 }
 0x230   : > { %v1145_v37 = vadd.f32 %v2392_v27, %v1144_v18  ;;  %v1594_v30 = vpop.f32.mrb[1].mxu1  ;;  %v1387_v51 = vadd.f32 %v1386_v49, %v1379_v41 }
 0x232   : > { %v1349_v40 = vsel %vm1322_vm8, %v1145_v37, 0.0  ;;  %vm1325_vm8 = vcmp.lt.s32.totalorder %v1316_v14, 8 }
 0x233   : > { %1358 = vst [vmem:[%s2397_s27 + $0x28] sm:$0xff] %v1349_v40  ;;  %v1381_v25 = vmul.f32 %v1349_v40, %v1349_v40 }
 0x24a   : > { %v1139_v35 = vpop.f32.mrb[8].mxu0 }
 0x24b   : > { %v1140_v4 = vadd.f32 %v2392_v27, %v1139_v35  ;;  %v1591_v56 = vpop.f32.mrb[9].mxu0 }
 0x24d   : > { %v1348_v5 = vsel %vm1321_vm15, %v1140_v4, 0.0 }
 0x24e   : > { %1357 = vst [vmem:[%s2397_s27 + $0x20] sm:$0xff] %v1348_v5  ;;  %v1365_v13 = vadd.f32 %v1364_v63, %v1348_v5  ;;  %v1380_v26 = vmul.f32 %v1348_v5, %v1348_v5 }
 0x24f   : > { %v1149_v15 = vpop.f32.mrb[2].mxu1 }
 0x250   : > { %v1150_v21 = vadd.f32 %v2392_v27, %v1149_v15  ;;  %v1597_v24 = vpop.f32.mrb[3].mxu1  ;;  %v1388_v28 = vadd.f32 %v1387_v51, %v1380_v26  ;;  %v1366_v49 = vadd.f32 %v1365_v13, %v1349_v40 }
 0x252   : > { %v1350_v11 = vsel %vm1323_vm1, %v1150_v21, 0.0  ;;  %v1389_v38 = vadd.f32 %v1388_v28, %v1381_v25 }
 0x253   : > { %1359 = vst [vmem:[%s2397_s27 + $0x30] sm:$0xff] %v1350_v11  ;;  %v1367_v12 = vadd.f32 %v1366_v49, %v1350_v11  ;;  %v1382_v16 = vmul.f32 %v1350_v11, %v1350_v11 }
 0x255   : > { %v1390_v39 = vadd.f32 %v1389_v38, %v1382_v16 }
 0x25f   : > { %v1154_v23 = vpop.f32.mrb[4].mxu1 }
 0x260   : > { %v1155_v50 = vadd.f32 %v2392_v27, %v1154_v23  ;;  %v1600_v52 = vpop.f32.mrb[5].mxu1 }
 0x262   : > { %v1351_v53 = vsel %vm1324_vm5, %v1155_v50, 0.0 }
 0x263   : > { %1360 = vst [vmem:[%s2397_s27 + $0x38] sm:$0xff] %v1351_v53  ;;  %v1368_v8 = vadd.f32 %v1367_v12, %v1351_v53  ;;  %v1383_v10 = vmul.f32 %v1351_v53, %v1351_v53 }
 0x265   : > { %v1391_v20 = vadd.f32 %v1390_v39, %v1383_v10 }
 0x267   : > { %v1159_v54 = vpop.f32.mrb[6].mxu1 }
 0x268   : > { %v1160_v19 = vadd.f32 %v2392_v27, %v1159_v54  ;;  %v1603_v17 = vpop.f32.mrb[7].mxu1 }
 0x26a   : > { %v1352_v55 = vsel %vm1325_vm8, %v1160_v19, 0.0 }
 0x26b   : > { %1361 = vst [vmem:[%s2397_s27 + $0x40] sm:$0xff] %v1352_v55  ;;  %v1369_v63 = vadd.f32 %v1368_v8, %v1352_v55  ;;  %v1384_v41 = vmul.f32 %v1352_v55, %v1352_v55 }
 0x26d   : > { %v1370_v18 = vrot.slane %v1369_v63, 4  ;;  %v1392_v37 = vadd.f32 %v1391_v20, %v1384_v41 }
 0x26f   : > { %v1371_v30 = vadd.f32 %v1370_v18, %v1369_v63  ;;  %v1393_v51 = vrot.slane %v1392_v37, 4 }
 0x271   : > { %v1372_v40 = vrot.slane %v1371_v30, 2  ;;  %v1394_v58 = vadd.f32 %v1393_v51, %v1392_v37 }
 0x273   : > { %v1373_v46 = vadd.f32 %v1372_v40, %v1371_v30  ;;  %v1395_v48 = vrot.slane %v1394_v58, 2 }
 0x275   : > { %v1374_v62 = vrot.slane %v1373_v46, 1  ;;  %v1396_v59 = vadd.f32 %v1395_v48, %v1394_v58 }
 0x277   : > { %v1397_v60 = vrot.slane %v1396_v59, 1  ;;  %v1375_v27 = vadd.f32 %v1374_v62, %v1373_v46 }
 0x279   : > { %v1398_v7 = vadd.f32 %v1397_v60, %v1396_v59 }
 0x27b   : > { %v1400_v36 = vsel %vm1399_vm9, %v1375_v27, %v1398_v7 }
 0x27c   : > { %1401 = vst [vmem:[%s239_s5] sm:$0x3] %v1400_v36 }
 0x27d PF: > { %s15_s17 = sadd.s32 1, %s1708_s17   ;;  %s2489_s15 = smov %s1704_s16 }
 0x27e   : > { %p12_p5 = scmp.ge.s32.totalorder %s15_s17, 4   ;;  %s2490_s16 = smov %s2492_s18 }
 0x280   :  { %14 = sbr.rel (!%p12_p5) target bundleno = 2 (0x2), region = 74 }

</bundles_post_ra>
